<compile_context>
chip_gen: v6e
topology: v6e:2x2x1
jax: 0.10.0
libtpu: 0.0.40
codegen_flags: <defaults>
</compile_context>

<pallas_src>
import jax
import jax.numpy as jnp
from jax.experimental import pallas as pl
from jax.experimental.pallas import tpu as pltpu


# ---------------------------------------------------------------------------
# Fused kernel: conv1/2/3 (BN folded, ReLU, pool) + global max + 2-layer MLP head
# ---------------------------------------------------------------------------
def _fused_kernel(xs_ref, w1_ref, b1_ref, w2_ref, b2_ref, w3_ref, b3_ref,
                  fw1_ref, fb1_ref, fw2_ref, fb2_ref,
                  o_ref,
                  h2_ref, h3_ref):
    """Whole forward pass for one batch element (grid=(B,)).

    xs_ref : (1, T, K*C0)   layer-1 input with the K taps stacked on channels
    w1_ref : (K*C0, C1)     layer-1 weight, taps folded into contraction, BN folded
    w2_ref : (K, C1, C2)    layer-2 per-tap weights, BN folded
    w3_ref : (K, C2, C3)    layer-3 per-tap weights, BN folded
    b*_ref : (1, C*)        conv bias with BN scale/shift folded in
    fw*/fb*                 MLP head weights/biases
    o_ref  : (1, 1, ncls)
    h2_ref : (T//2 + 16, C1) VMEM halo scratch holding layer-2's input
    h3_ref : (T//4 + 16, C2) VMEM halo scratch holding layer-3's input
    """
    f32 = jnp.float32

    def pool2(y):
        # MaxPool1d(kernel_size=2), floor mode (drops a trailing odd element).
        # Result stays in VMEM (fused network), so this never hits the HBM store path.
        t, c = y.shape
        t_out = t // 2
        return jnp.max(y[: 2 * t_out, :].reshape(t_out, 2, c), axis=1)

    def conv_taps(h_ref, w_ref, b_ref, t_len):
        # h_ref holds the zero-haloed layer input at rows [8, 8 + t_len); the three
        # tap windows are shifted static slices starting at rows 7/8/9 -- pure index
        # arithmetic, no concatenates, no copies.
        K = w_ref.shape[0]
        c_out = w_ref.shape[2]
        acc = jnp.zeros((t_len, c_out), f32)
        for k in range(K):                         # static unroll (K == 3)
            win = h_ref[7 + k: 7 + k + t_len, :]   # shifted load (cheap)
            acc = acc + jnp.dot(win, w_ref[k], preferred_element_type=f32)
        return jnp.maximum(acc + b_ref[...], 0.0)  # folded bias+BN, then ReLU

    # ---- layer 1: taps pre-folded into the contraction -> one depth-(K*C0) dot ----
    xs = xs_ref[0]                                                  # (T, K*C0)
    y1 = jnp.dot(xs, w1_ref[...], preferred_element_type=f32) + b1_ref[...]
    y1 = jnp.maximum(y1, 0.0)
    p1 = pool2(y1)                                                  # (T//2, C1)
    t1 = p1.shape[0]

    # ---- layer 2 ----
    h2_ref[...] = jnp.zeros_like(h2_ref)       # zero halo rows
    h2_ref[8: 8 + t1, :] = p1                  # tile-aligned store (sublane offset 8)
    y2 = conv_taps(h2_ref, w2_ref, b2_ref, t1)
    p2 = pool2(y2)                                                  # (T//4, C2)
    t2 = p2.shape[0]

    # ---- layer 3 ----
    h3_ref[...] = jnp.zeros_like(h3_ref)
    h3_ref[8: 8 + t2, :] = p2
    y3 = conv_taps(h3_ref, w3_ref, b3_ref, t2)                      # (T//4, C3)

    # ---- MaxPool1d(2) + AdaptiveMaxPool1d(1): max of pairwise maxes == global max
    #      over the first 2*(t2//2) rows (floor semantics of MaxPool1d). ----
    g = jnp.max(y3[: 2 * (t2 // 2), :], axis=0, keepdims=True)      # (1, C3)

    # ---- MLP head ----
    h = jnp.dot(g, fw1_ref[...], preferred_element_type=f32) + fb1_ref[...]
    h = jnp.maximum(h, 0.0)
    out = jnp.dot(h, fw2_ref[...], preferred_element_type=f32) + fb2_ref[...]
    o_ref[0] = out.astype(o_ref.dtype)


# ---------------------------------------------------------------------------
# Wrappers
# ---------------------------------------------------------------------------
def _fused_forward(xs, params):
    B, T, c_stacked = xs.shape
    w1f, b1f = params["convs"][0]["w"], params["convs"][0]["b"]
    w2f, b2f = params["convs"][1]["w"], params["convs"][1]["b"]
    w3f, b3f = params["convs"][2]["w"], params["convs"][2]["b"]
    fw1, fb1 = params["w1"], params["b1"]
    fw2, fb2 = params["w2"], params["b2"]
    c1 = w1f.shape[1]
    c2 = w2f.shape[2]
    ncls = fw2.shape[1]
    t1, t2 = T // 2, T // 4

    full2 = lambda a: pl.BlockSpec(a.shape, lambda b: (0, 0))       # whole-array block
    full3 = lambda a: pl.BlockSpec(a.shape, lambda b: (0, 0, 0))

    out = pl.pallas_call(
        _fused_kernel,
        out_shape=jax.ShapeDtypeStruct((B, 1, ncls), xs.dtype),
        grid=(B,),
        in_specs=[
            pl.BlockSpec((1, T, c_stacked), lambda b: (b, 0, 0)),
            full2(w1f), full2(b1f),
            full3(w2f), full2(b2f),
            full3(w3f), full2(b3f),
            full2(fw1), full2(fb1),
            full2(fw2), full2(fb2),
        ],
        out_specs=pl.BlockSpec((1, 1, ncls), lambda b: (b, 0, 0)),
        scratch_shapes=[
            pltpu.VMEM((t1 + 16, c1), jnp.float32),   # layer-2 halo scratch
            pltpu.VMEM((t2 + 16, c2), jnp.float32),   # layer-3 halo scratch
        ],
        compiler_params=pltpu.CompilerParams(dimension_semantics=("parallel",)),
    )(xs, w1f, b1f, w2f, b2f, w3f, b3f, fw1, fb1, fw2, fb2)
    return out[:, 0, :]


@jax.jit
def forward(x, params):
    """x: (B, T, in_ch) zero-padded batch-first sequences (pad_packed_sequence effect)."""
    B, T, _ = x.shape
    # Halo-stack the K=3 taps of layer 1 onto the channel axis (layout plumbing only):
    # xs[:, t] = [x[t-1], x[t], x[t+1]] with zero halo, so layer 1 becomes a single
    # MXU dot with contraction depth K*in_ch = 27 instead of three depth-9 dots.
    x_prev = jnp.pad(x, ((0, 0), (1, 0), (0, 0)))[:, :T, :]   # x[t-1]
    x_next = jnp.pad(x, ((0, 0), (0, 1), (0, 0)))[:, 1:, :]   # x[t+1]
    xs = jnp.concatenate([x_prev, x, x_next], axis=-1)        # (B, T, 3*in_ch)
    return _fused_forward(xs, params)


# ---------------------------------------------------------------------------
# Deterministic parameter init (shapes from PureConvClassifier.__init__),
# with conv bias + eval-mode BatchNorm folded into the weights.
# ---------------------------------------------------------------------------
def init_params(key, in_ch=9, conv_ch=(64, 128, 256), kernel=3, num_classes=6):
    keys = jax.random.split(key, len(conv_ch) + 2)
    eps = 1e-5
    convs = []
    prev = in_ch
    for i, ch in enumerate(conv_ch):
        kw, kb = jax.random.split(keys[i])
        # PyTorch Conv1d weight layout: (C_out, C_in, K)
        w_pt = jax.random.normal(kw, (ch, prev, kernel), jnp.float32)
        w_pt = w_pt * (1.0 / (prev * kernel) ** 0.5)
        b_pt = jax.random.normal(kb, (ch,), jnp.float32) * 0.01
        # BatchNorm1d eval-mode statistics at init: gamma=1, beta=0, mean=0, var=1.
        gamma = jnp.ones((ch,), jnp.float32)
        beta = jnp.zeros((ch,), jnp.float32)
        rmean = jnp.zeros((ch,), jnp.float32)
        rvar = jnp.ones((ch,), jnp.float32)
        scale = gamma / jnp.sqrt(rvar + eps)
        shift = beta - rmean * scale
        # Fold conv bias + BN into the weights (kernel only does dot + bias).
        w_tap = jnp.transpose(w_pt, (2, 1, 0)) * scale[None, None, :]   # (K, Cin, Cout)
        b_fold = (b_pt * scale + shift).reshape(1, ch)
        if i == 0:
            # Layer 1: taps folded into the contraction -> (K*Cin, Cout)
            w_fold = w_tap.reshape(kernel * prev, ch)
        else:
            w_fold = w_tap                                              # (K, Cin, Cout)
        convs.append(dict(w=w_fold, b=b_fold))
        prev = ch

    half = prev // 2
    k1w, k1b = jax.random.split(keys[-2])
    k2w, k2b = jax.random.split(keys[-1])
    w1 = jax.random.normal(k1w, (prev, half), jnp.float32) * (1.0 / prev ** 0.5)
    b1 = (jax.random.normal(k1b, (half,), jnp.float32) * 0.01).reshape(1, half)
    w2 = jax.random.normal(k2w, (half, num_classes), jnp.float32) * (1.0 / half ** 0.5)
    b2 = (jax.random.normal(k2b, (num_classes,), jnp.float32) * 0.01).reshape(1, num_classes)
    return dict(convs=convs, w1=w1, b1=b1, w2=w2, b2=b2)


# ---------------------------------------------------------------------------
# Pure-JAX reference (same folded parameters) for a correctness cross-check.
# ---------------------------------------------------------------------------
def _ref_forward(x, params):
    hi = jax.lax.Precision.HIGHEST

    def pool(y):
        b, t, c = y.shape
        t2 = t // 2
        return jnp.max(y[:, : 2 * t2, :].reshape(b, t2, 2, c), axis=2)

    B, T, _ = x.shape
    xp = jnp.pad(x, ((0, 0), (1, 0), (0, 0)))[:, :T, :]
    xn = jnp.pad(x, ((0, 0), (0, 1), (0, 0)))[:, 1:, :]
    a = jnp.concatenate([xp, x, xn], axis=-1)
    w, b = params["convs"][0]["w"], params["convs"][0]["b"]
    y = jnp.maximum(jnp.einsum("btc,cd->btd", a, w, precision=hi) + b, 0.0)
    y = pool(y)
    for layer in params["convs"][1:]:
        w, b = layer["w"], layer["b"]
        t_cur = y.shape[1]
        yp = jnp.pad(y, ((0, 0), (1, 1), (0, 0)))
        acc = 0.0
        for k in range(w.shape[0]):
            acc = acc + jnp.einsum("btc,cd->btd", yp[:, k:k + t_cur, :], w[k], precision=hi)
        y = jnp.maximum(acc + b, 0.0)
        y = pool(y)
    g = jnp.max(y, axis=1)
    h = jnp.maximum(jnp.dot(g, params["w1"], precision=hi) + params["b1"], 0.0)
    return jnp.dot(h, params["w2"], precision=hi) + params["b2"]


# ---------------------------------------------------------------------------
if __name__ == "__main__":
    key = jax.random.PRNGKey(0)
    kp, kx = jax.random.split(key)
    params = init_params(kp)

    # Input consistent with the module: batch of padded sequences, in_ch=9 features.
    B, T, in_ch = 2, 16, 9
    x = jax.random.normal(kx, (B, T, in_ch), jnp.float32)
    # Mimic pad_packed_sequence(batch_first=True): zero positions past each length.
    lengths = jnp.array([16, 12])
    mask = (jnp.arange(T)[None, :] < lengths[:, None])[:, :, None]
    x = x * mask.astype(x.dtype)

    out = forward(x, params)
    jax.block_until_ready(out)
    assert out.shape == (B, 6), out.shape
    assert bool(jnp.all(jnp.isfinite(out)))

    ref = _ref_forward(x, params)
    assert bool(jnp.allclose(out, ref, rtol=2e-2, atol=2e-2)), (out, ref)

    print("KERNEL_OK")
</pallas_src>

<mosaic_0001>
module attributes {stable_mosaic.version = 11 : i64} {
  func.func @_fused_kernel(%arg0: i32, %arg1: memref<1x16x27xf32, #tpu.memory_space<vmem>>, %arg2: memref<27x64xf32, #tpu.memory_space<vmem>>, %arg3: memref<1x64xf32, #tpu.memory_space<vmem>>, %arg4: memref<3x64x128xf32, #tpu.memory_space<vmem>>, %arg5: memref<1x128xf32, #tpu.memory_space<vmem>>, %arg6: memref<3x128x256xf32, #tpu.memory_space<vmem>>, %arg7: memref<1x256xf32, #tpu.memory_space<vmem>>, %arg8: memref<256x128xf32, #tpu.memory_space<vmem>>, %arg9: memref<1x128xf32, #tpu.memory_space<vmem>>, %arg10: memref<128x6xf32, #tpu.memory_space<vmem>>, %arg11: memref<1x6xf32, #tpu.memory_space<vmem>>, %arg12: memref<1x1x6xf32, #tpu.memory_space<vmem>>, %arg13: memref<24x64xf32, #tpu.memory_space<vmem>>, %arg14: memref<20x128xf32, #tpu.memory_space<vmem>>) attributes {dimension_semantics = [#tpu.dimension_semantics<parallel>], iteration_bounds = array<i64: 2>, scalar_prefetch = 0 : i64, scratch_operands = 2 : i64, tpu.core_type = #tpu.core_type<tc>, window_params = [{transform_indices = @transform_0, window_bounds = array<i64: 1, 16, 27>}, {pipeline_mode = #tpu.pipeline_mode<synchronous>, transform_indices = @transform_1, window_bounds = array<i64: 27, 64>}, {pipeline_mode = #tpu.pipeline_mode<synchronous>, transform_indices = @transform_2, window_bounds = array<i64: 1, 64>}, {pipeline_mode = #tpu.pipeline_mode<synchronous>, transform_indices = @transform_3, window_bounds = array<i64: 3, 64, 128>}, {pipeline_mode = #tpu.pipeline_mode<synchronous>, transform_indices = @transform_4, window_bounds = array<i64: 1, 128>}, {pipeline_mode = #tpu.pipeline_mode<synchronous>, transform_indices = @transform_5, window_bounds = array<i64: 3, 128, 256>}, {pipeline_mode = #tpu.pipeline_mode<synchronous>, transform_indices = @transform_6, window_bounds = array<i64: 1, 256>}, {pipeline_mode = #tpu.pipeline_mode<synchronous>, transform_indices = @transform_7, window_bounds = array<i64: 256, 128>}, {pipeline_mode = #tpu.pipeline_mode<synchronous>, transform_indices = @transform_8, window_bounds = array<i64: 1, 128>}, {pipeline_mode = #tpu.pipeline_mode<synchronous>, transform_indices = @transform_9, window_bounds = array<i64: 128, 6>}, {pipeline_mode = #tpu.pipeline_mode<synchronous>, transform_indices = @transform_10, window_bounds = array<i64: 1, 6>}, {transform_indices = @transform_11, window_bounds = array<i64: 1, 1, 6>}]} {
    %c0 = arith.constant 0 : index
    %c0_0 = arith.constant 0 : index
    %c0_1 = arith.constant 0 : index
    %0 = vector.load %arg1[%c0, %c0_0, %c0_1] : memref<1x16x27xf32, #tpu.memory_space<vmem>>, vector<1x16x27xf32>
    %1 = vector.shape_cast %0 : vector<1x16x27xf32> to vector<16x27xf32>
    %c0_2 = arith.constant 0 : index
    %c0_3 = arith.constant 0 : index
    %2 = vector.load %arg2[%c0_2, %c0_3] : memref<27x64xf32, #tpu.memory_space<vmem>>, vector<27x64xf32>
    %cst = arith.constant dense<0.000000e+00> : vector<16x64xf32>
    %3 = tpu.matmul %1, %2, %cst {dimension_numbers = #tpu.dot_dimension_numbers<[1], [0], [0], [1], [0, 0, 1, 1], [], []>} : vector<16x27xf32>, vector<27x64xf32>, vector<16x64xf32> -> vector<16x64xf32>
    %c0_4 = arith.constant 0 : index
    %c0_5 = arith.constant 0 : index
    %4 = vector.load %arg3[%c0_4, %c0_5] : memref<1x64xf32, #tpu.memory_space<vmem>>, vector<1x64xf32>
    %5 = vector.broadcast %4 : vector<1x64xf32> to vector<16x64xf32>
    %6 = arith.addf %3, %5 : vector<16x64xf32>
    %cst_6 = arith.constant 0.000000e+00 : f32
    %7 = vector.broadcast %cst_6 : f32 to vector<16x64xf32>
    %8 = arith.maximumf %6, %7 : vector<16x64xf32>
    %9 = vector.shape_cast %8 : vector<16x64xf32> to vector<8x2x64xf32>
    %cst_7 = arith.constant dense<0xFF800000> : vector<8x64xf32>
    %10 = vector.multi_reduction <maximumf>, %9, %cst_7 [1] : vector<8x2x64xf32> to vector<8x64xf32>
    %cst_8 = arith.constant 0.000000e+00 : f32
    %11 = vector.broadcast %cst_8 : f32 to vector<24x64xf32>
    %c0_9 = arith.constant 0 : index
    %c0_10 = arith.constant 0 : index
    %12 = vector.load %arg13[%c0_9, %c0_10] : memref<24x64xf32, #tpu.memory_space<vmem>>, vector<24x64xf32>
    tpu.vector_store %arg13[%c0_9, %c0_10], %11 {strides = array<i32>} : memref<24x64xf32, #tpu.memory_space<vmem>>, vector<24x64xf32>,
    %c8 = arith.constant 8 : index
    %c0_11 = arith.constant 0 : index
    %13 = vector.load %arg13[%c8, %c0_11] : memref<24x64xf32, #tpu.memory_space<vmem>>, vector<8x64xf32>
    tpu.vector_store %arg13[%c8, %c0_11], %10 {strides = array<i32>} : memref<24x64xf32, #tpu.memory_space<vmem>>, vector<8x64xf32>,
    %cst_12 = arith.constant 0.000000e+00 : f32
    %14 = vector.broadcast %cst_12 : f32 to vector<8x128xf32>
    %c7 = arith.constant 7 : index
    %c0_13 = arith.constant 0 : index
    %15 = vector.load %arg13[%c7, %c0_13] : memref<24x64xf32, #tpu.memory_space<vmem>>, vector<8x64xf32>
    %c0_14 = arith.constant 0 : index
    %c0_15 = arith.constant 0 : index
    %c0_16 = arith.constant 0 : index
    %16 = vector.load %arg4[%c0_14, %c0_15, %c0_16] : memref<3x64x128xf32, #tpu.memory_space<vmem>>, vector<1x64x128xf32>
    %17 = vector.shape_cast %16 : vector<1x64x128xf32> to vector<64x128xf32>
    %cst_17 = arith.constant dense<0.000000e+00> : vector<8x128xf32>
    %18 = tpu.matmul %15, %17, %cst_17 {dimension_numbers = #tpu.dot_dimension_numbers<[1], [0], [0], [1], [0, 0, 1, 1], [], []>} : vector<8x64xf32>, vector<64x128xf32>, vector<8x128xf32> -> vector<8x128xf32>
    %19 = arith.addf %14, %18 : vector<8x128xf32>
    %c8_18 = arith.constant 8 : index
    %c0_19 = arith.constant 0 : index
    %20 = vector.load %arg13[%c8_18, %c0_19] : memref<24x64xf32, #tpu.memory_space<vmem>>, vector<8x64xf32>
    %c1 = arith.constant 1 : index
    %c0_20 = arith.constant 0 : index
    %c0_21 = arith.constant 0 : index
    %21 = vector.load %arg4[%c1, %c0_20, %c0_21] : memref<3x64x128xf32, #tpu.memory_space<vmem>>, vector<1x64x128xf32>
    %22 = vector.shape_cast %21 : vector<1x64x128xf32> to vector<64x128xf32>
    %cst_22 = arith.constant dense<0.000000e+00> : vector<8x128xf32>
    %23 = tpu.matmul %20, %22, %cst_22 {dimension_numbers = #tpu.dot_dimension_numbers<[1], [0], [0], [1], [0, 0, 1, 1], [], []>} : vector<8x64xf32>, vector<64x128xf32>, vector<8x128xf32> -> vector<8x128xf32>
    %24 = arith.addf %19, %23 : vector<8x128xf32>
    %c9 = arith.constant 9 : index
    %c0_23 = arith.constant 0 : index
    %25 = vector.load %arg13[%c9, %c0_23] : memref<24x64xf32, #tpu.memory_space<vmem>>, vector<8x64xf32>
    %c2 = arith.constant 2 : index
    %c0_24 = arith.constant 0 : index
    %c0_25 = arith.constant 0 : index
    %26 = vector.load %arg4[%c2, %c0_24, %c0_25] : memref<3x64x128xf32, #tpu.memory_space<vmem>>, vector<1x64x128xf32>
    %27 = vector.shape_cast %26 : vector<1x64x128xf32> to vector<64x128xf32>
    %cst_26 = arith.constant dense<0.000000e+00> : vector<8x128xf32>
    %28 = tpu.matmul %25, %27, %cst_26 {dimension_numbers = #tpu.dot_dimension_numbers<[1], [0], [0], [1], [0, 0, 1, 1], [], []>} : vector<8x64xf32>, vector<64x128xf32>, vector<8x128xf32> -> vector<8x128xf32>
    %29 = arith.addf %24, %28 : vector<8x128xf32>
    %c0_27 = arith.constant 0 : index
    %c0_28 = arith.constant 0 : index
    %30 = vector.load %arg5[%c0_27, %c0_28] : memref<1x128xf32, #tpu.memory_space<vmem>>, vector<1x128xf32>
    %31 = vector.broadcast %30 : vector<1x128xf32> to vector<8x128xf32>
    %32 = arith.addf %29, %31 : vector<8x128xf32>
    %cst_29 = arith.constant 0.000000e+00 : f32
    %33 = vector.broadcast %cst_29 : f32 to vector<8x128xf32>
    %34 = arith.maximumf %32, %33 : vector<8x128xf32>
    %35 = vector.shape_cast %34 : vector<8x128xf32> to vector<4x2x128xf32>
    %cst_30 = arith.constant dense<0xFF800000> : vector<4x128xf32>
    %36 = vector.multi_reduction <maximumf>, %35, %cst_30 [1] : vector<4x2x128xf32> to vector<4x128xf32>
    %cst_31 = arith.constant 0.000000e+00 : f32
    %37 = vector.broadcast %cst_31 : f32 to vector<20x128xf32>
    %c0_32 = arith.constant 0 : index
    %c0_33 = arith.constant 0 : index
    %38 = vector.load %arg14[%c0_32, %c0_33] : memref<20x128xf32, #tpu.memory_space<vmem>>, vector<20x128xf32>
    tpu.vector_store %arg14[%c0_32, %c0_33], %37 {strides = array<i32>} : memref<20x128xf32, #tpu.memory_space<vmem>>, vector<20x128xf32>,
    %c8_34 = arith.constant 8 : index
    %c0_35 = arith.constant 0 : index
    %39 = vector.load %arg14[%c8_34, %c0_35] : memref<20x128xf32, #tpu.memory_space<vmem>>, vector<4x128xf32>
    tpu.vector_store %arg14[%c8_34, %c0_35], %36 {strides = array<i32>} : memref<20x128xf32, #tpu.memory_space<vmem>>, vector<4x128xf32>,
    %cst_36 = arith.constant 0.000000e+00 : f32
    %40 = vector.broadcast %cst_36 : f32 to vector<4x256xf32>
    %c7_37 = arith.constant 7 : index
    %c0_38 = arith.constant 0 : index
    %41 = vector.load %arg14[%c7_37, %c0_38] : memref<20x128xf32, #tpu.memory_space<vmem>>, vector<4x128xf32>
    %c0_39 = arith.constant 0 : index
    %c0_40 = arith.constant 0 : index
    %c0_41 = arith.constant 0 : index
    %42 = vector.load %arg6[%c0_39, %c0_40, %c0_41] : memref<3x128x256xf32, #tpu.memory_space<vmem>>, vector<1x128x256xf32>
    %43 = vector.shape_cast %42 : vector<1x128x256xf32> to vector<128x256xf32>
    %cst_42 = arith.constant dense<0.000000e+00> : vector<4x256xf32>
    %44 = tpu.matmul %41, %43, %cst_42 {dimension_numbers = #tpu.dot_dimension_numbers<[1], [0], [0], [1], [0, 0, 1, 1], [], []>} : vector<4x128xf32>, vector<128x256xf32>, vector<4x256xf32> -> vector<4x256xf32>
    %45 = arith.addf %40, %44 : vector<4x256xf32>
    %c8_43 = arith.constant 8 : index
    %c0_44 = arith.constant 0 : index
    %46 = vector.load %arg14[%c8_43, %c0_44] : memref<20x128xf32, #tpu.memory_space<vmem>>, vector<4x128xf32>
    %c1_45 = arith.constant 1 : index
    %c0_46 = arith.constant 0 : index
    %c0_47 = arith.constant 0 : index
    %47 = vector.load %arg6[%c1_45, %c0_46, %c0_47] : memref<3x128x256xf32, #tpu.memory_space<vmem>>, vector<1x128x256xf32>
    %48 = vector.shape_cast %47 : vector<1x128x256xf32> to vector<128x256xf32>
    %cst_48 = arith.constant dense<0.000000e+00> : vector<4x256xf32>
    %49 = tpu.matmul %46, %48, %cst_48 {dimension_numbers = #tpu.dot_dimension_numbers<[1], [0], [0], [1], [0, 0, 1, 1], [], []>} : vector<4x128xf32>, vector<128x256xf32>, vector<4x256xf32> -> vector<4x256xf32>
    %50 = arith.addf %45, %49 : vector<4x256xf32>
    %c9_49 = arith.constant 9 : index
    %c0_50 = arith.constant 0 : index
    %51 = vector.load %arg14[%c9_49, %c0_50] : memref<20x128xf32, #tpu.memory_space<vmem>>, vector<4x128xf32>
    %c2_51 = arith.constant 2 : index
    %c0_52 = arith.constant 0 : index
    %c0_53 = arith.constant 0 : index
    %52 = vector.load %arg6[%c2_51, %c0_52, %c0_53] : memref<3x128x256xf32, #tpu.memory_space<vmem>>, vector<1x128x256xf32>
    %53 = vector.shape_cast %52 : vector<1x128x256xf32> to vector<128x256xf32>
    %cst_54 = arith.constant dense<0.000000e+00> : vector<4x256xf32>
    %54 = tpu.matmul %51, %53, %cst_54 {dimension_numbers = #tpu.dot_dimension_numbers<[1], [0], [0], [1], [0, 0, 1, 1], [], []>} : vector<4x128xf32>, vector<128x256xf32>, vector<4x256xf32> -> vector<4x256xf32>
    %55 = arith.addf %50, %54 : vector<4x256xf32>
    %c0_55 = arith.constant 0 : index
    %c0_56 = arith.constant 0 : index
    %56 = vector.load %arg7[%c0_55, %c0_56] : memref<1x256xf32, #tpu.memory_space<vmem>>, vector<1x256xf32>
    %57 = vector.broadcast %56 : vector<1x256xf32> to vector<4x256xf32>
    %58 = arith.addf %55, %57 : vector<4x256xf32>
    %cst_57 = arith.constant 0.000000e+00 : f32
    %59 = vector.broadcast %cst_57 : f32 to vector<4x256xf32>
    %60 = arith.maximumf %58, %59 : vector<4x256xf32>
    %cst_58 = arith.constant dense<0xFF800000> : vector<256xf32>
    %61 = vector.multi_reduction <maximumf>, %60, %cst_58 [0] : vector<4x256xf32> to vector<256xf32>
    %62 = vector.shape_cast %61 : vector<256xf32> to vector<1x256xf32>
    %c0_59 = arith.constant 0 : index
    %c0_60 = arith.constant 0 : index
    %63 = vector.load %arg8[%c0_59, %c0_60] : memref<256x128xf32, #tpu.memory_space<vmem>>, vector<256x128xf32>
    %cst_61 = arith.constant dense<0.000000e+00> : vector<1x128xf32>
    %64 = tpu.matmul %62, %63, %cst_61 {dimension_numbers = #tpu.dot_dimension_numbers<[1], [0], [0], [1], [0, 0, 1, 1], [], []>} : vector<1x256xf32>, vector<256x128xf32>, vector<1x128xf32> -> vector<1x128xf32>
    %c0_62 = arith.constant 0 : index
    %c0_63 = arith.constant 0 : index
    %65 = vector.load %arg9[%c0_62, %c0_63] : memref<1x128xf32, #tpu.memory_space<vmem>>, vector<1x128xf32>
    %66 = arith.addf %64, %65 : vector<1x128xf32>
    %cst_64 = arith.constant 0.000000e+00 : f32
    %67 = vector.broadcast %cst_64 : f32 to vector<1x128xf32>
    %68 = arith.maximumf %66, %67 : vector<1x128xf32>
    %c0_65 = arith.constant 0 : index
    %c0_66 = arith.constant 0 : index
    %69 = vector.load %arg10[%c0_65, %c0_66] : memref<128x6xf32, #tpu.memory_space<vmem>>, vector<128x6xf32>
    %cst_67 = arith.constant dense<0.000000e+00> : vector<1x6xf32>
    %70 = tpu.matmul %68, %69, %cst_67 {dimension_numbers = #tpu.dot_dimension_numbers<[1], [0], [0], [1], [0, 0, 1, 1], [], []>} : vector<1x128xf32>, vector<128x6xf32>, vector<1x6xf32> -> vector<1x6xf32>
    %c0_68 = arith.constant 0 : index
    %c0_69 = arith.constant 0 : index
    %71 = vector.load %arg11[%c0_68, %c0_69] : memref<1x6xf32, #tpu.memory_space<vmem>>, vector<1x6xf32>
    %72 = arith.addf %70, %71 : vector<1x6xf32>
    %c0_70 = arith.constant 0 : index
    %c0_71 = arith.constant 0 : index
    %c0_72 = arith.constant 0 : index
    %73 = vector.load %arg12[%c0_70, %c0_71, %c0_72] : memref<1x1x6xf32, #tpu.memory_space<vmem>>, vector<1x1x6xf32>
    %74 = vector.shape_cast %73 : vector<1x1x6xf32> to vector<1x6xf32>
    %75 = vector.shape_cast %72 : vector<1x6xf32> to vector<1x1x6xf32>
    tpu.vector_store %arg12[%c0_70, %c0_71, %c0_72], %75 {strides = array<i32>} : memref<1x1x6xf32, #tpu.memory_space<vmem>>, vector<1x1x6xf32>,
    return
  }
  func.func @transform_0(%arg0: i32) -> (i32, i32, i32) {
    %c0_i32 = arith.constant 0 : i32
    %c0_i32_0 = arith.constant 0 : i32
    %c0_i32_1 = arith.constant 0 : i32
    return %arg0, %c0_i32, %c0_i32_0 : i32, i32, i32
  }
  func.func @transform_1(%arg0: i32) -> (i32, i32) {
    %c0_i32 = arith.constant 0 : i32
    %c0_i32_0 = arith.constant 0 : i32
    %c0_i32_1 = arith.constant 0 : i32
    return %c0_i32, %c0_i32_0 : i32, i32
  }
  func.func @transform_2(%arg0: i32) -> (i32, i32) {
    %c0_i32 = arith.constant 0 : i32
    %c0_i32_0 = arith.constant 0 : i32
    %c0_i32_1 = arith.constant 0 : i32
    return %c0_i32, %c0_i32_0 : i32, i32
  }
  func.func @transform_3(%arg0: i32) -> (i32, i32, i32) {
    %c0_i32 = arith.constant 0 : i32
    %c0_i32_0 = arith.constant 0 : i32
    %c0_i32_1 = arith.constant 0 : i32
    %c0_i32_2 = arith.constant 0 : i32
    return %c0_i32, %c0_i32_0, %c0_i32_1 : i32, i32, i32
  }
  func.func @transform_4(%arg0: i32) -> (i32, i32) {
    %c0_i32 = arith.constant 0 : i32
    %c0_i32_0 = arith.constant 0 : i32
    %c0_i32_1 = arith.constant 0 : i32
    return %c0_i32, %c0_i32_0 : i32, i32
  }
  func.func @transform_5(%arg0: i32) -> (i32, i32, i32) {
    %c0_i32 = arith.constant 0 : i32
    %c0_i32_0 = arith.constant 0 : i32
    %c0_i32_1 = arith.constant 0 : i32
    %c0_i32_2 = arith.constant 0 : i32
    return %c0_i32, %c0_i32_0, %c0_i32_1 : i32, i32, i32
  }
  func.func @transform_6(%arg0: i32) -> (i32, i32) {
    %c0_i32 = arith.constant 0 : i32
    %c0_i32_0 = arith.constant 0 : i32
    %c0_i32_1 = arith.constant 0 : i32
    return %c0_i32, %c0_i32_0 : i32, i32
  }
  func.func @transform_7(%arg0: i32) -> (i32, i32) {
    %c0_i32 = arith.constant 0 : i32
    %c0_i32_0 = arith.constant 0 : i32
    %c0_i32_1 = arith.constant 0 : i32
    return %c0_i32, %c0_i32_0 : i32, i32
  }
  func.func @transform_8(%arg0: i32) -> (i32, i32) {
    %c0_i32 = arith.constant 0 : i32
    %c0_i32_0 = arith.constant 0 : i32
    %c0_i32_1 = arith.constant 0 : i32
    return %c0_i32, %c0_i32_0 : i32, i32
  }
  func.func @transform_9(%arg0: i32) -> (i32, i32) {
    %c0_i32 = arith.constant 0 : i32
    %c0_i32_0 = arith.constant 0 : i32
    %c0_i32_1 = arith.constant 0 : i32
    return %c0_i32, %c0_i32_0 : i32, i32
  }
  func.func @transform_10(%arg0: i32) -> (i32, i32) {
    %c0_i32 = arith.constant 0 : i32
    %c0_i32_0 = arith.constant 0 : i32
    %c0_i32_1 = arith.constant 0 : i32
    return %c0_i32, %c0_i32_0 : i32, i32
  }
  func.func @transform_11(%arg0: i32) -> (i32, i32, i32) {
    %c0_i32 = arith.constant 0 : i32
    %c0_i32_0 = arith.constant 0 : i32
    %c0_i32_1 = arith.constant 0 : i32
    return %arg0, %c0_i32, %c0_i32_0 : i32, i32, i32
  }
}

</mosaic_0001>

<bundles_post_ra>
// kernel: forward.1
= control target key start
LH: loop header
LB: loop body
LE: loop exit
PB: predicated region body
PF: predicated region fallthrough
CT: control target
= control target key end

     0   :  { %16 = vsyncpa [#allocation5], 0  ;;  %s2464_s0 = inlined_call_operand.vmem [shape: f32[2,16,27], index: 0, kind: input, shape index: {}]   ;;  %s2465_s1 = inlined_call_operand.vmem [shape: f32[27,64], index: 1, kind: input, shape index: {}]   ;;  %s2466_s2 = inlined_call_operand.vmem [shape: f32[1,64], index: 2, kind: input, shape index: {}]   ;;  %s2467_s3 = inlined_call_operand.hbm [shape: f32[3,64,128], index: 3, kind: input, shape index: {}]   ;;  %s2468_s4 = inlined_call_operand.vmem [shape: f32[1,128], index: 4, kind: input, shape index: {}]   ;;  %s2469_s5 = inlined_call_operand.hbm [shape: f32[3,128,256], index: 5, kind: input, shape index: {}]   ;;  %s2470_s6 = inlined_call_operand.vmem [shape: f32[1,256], index: 6, kind: input, shape index: {}]   ;;  %s2471_s7 = inlined_call_operand.vmem [shape: f32[256,128], index: 7, kind: input, shape index: {}]   ;;  %s2472_s8 = inlined_call_operand.vmem [shape: f32[1,128], index: 8, kind: input, shape index: {}]   ;;  %s2473_s9 = inlined_call_operand.vmem [shape: f32[128,6], index: 9, kind: input, shape index: {}]   ;;  %s2474_s10 = inlined_call_operand.vmem [shape: f32[1,6], index: 10, kind: input, shape index: {}]   ;;  %s2475_s11 = inlined_call_operand.hbm [shape: f32[2,1,6], index: 11, kind: output, shape index: {}]  }
   0x1   :  { %17 = vsyncpa [#allocation8], 0 }
   0x2   :  { %18 = vsyncpa [#allocation6], 0 }
   0x3   :  { %20 = vsyncpa [#allocation6 + $0x1], 0  ;;  %s2065_s17 = smov 0   ;;  %s2067_s18 = smov 0  }
   0x4   :  { %s2069_s19 = smov 0   ;;  %s2071_s20 = smov 0  }
   0x5 LB: > { %2480 = sst [smem:[#allocation13_spill]] %s1989_s19  ;;  %s2086_s21 = sadd.s32 4294967295, %s1993_s20   ;;  %s1993_s20 = sphi %s2071_s20, %s2492_s20   ;;  %s1989_s19 = sphi %s2069_s19, %s2494_s19   ;;  %s1985_s18 = sphi %s2067_s18, %s2496_s18   ;;  %s1981_s17 = sphi %s2065_s17, %s2495_s17  }
   0x6   : > { %s1595_s22 = sadd.s32 4294967294, %s1993_s20   ;;  %s2090_s23 = sadd.s32 1, %s1993_s20  }
   0x7   : > { %2481 = sst [smem:[#allocation14_spill]] %s2090_s23  ;;  %s269_s24 = sadd.s32 1, %s1989_s19 }
   0x8   : > { %s266_s25 = ssub.s32 %s1993_s20, %s2090_s23  ;;  %p279_p0 = scmp.ne.s32.totalorder %s1989_s19, %s1985_s18 }
   0x9   : > { %p267_p1 = scmp.eq.s32.totalorder %s266_s25, 0  ;;  %p280_p2 = scmp.eq.s32.totalorder %s2086_s21, 1 }
   0xa   : > { %p285_p3 = scmp.ne.s32.totalorder %s1985_s18, %s1981_s17  ;;  %p286_p4 = scmp.eq.s32.totalorder %s1595_s22, 1 }
   0xb   : > { %s2101_s26 = scalar_select %p267_p1, %s1989_s19, %s269_s24  }
   0xc   : > { %p2103_p5 = por %p280_p2, %p279_p0  ;;  %p2107_p6 = por %p286_p4, %p285_p3 }
   0xd   : > { %2482 = sst [smem:[#allocation15_spill]] %s2101_s26  ;;  %p1596_p7 = scmp.ge.s32.totalorder %s1993_s20, 1 }
   0xe   : > { %s2484_s28 = scalar_select %p2107_p6, 1, 0 }
   0xf   : > { %p293_p8 = scmp.lt.s32.totalorder %s1993_s20, 3  ;;  %p2476_p9 = scmp.eq.s32.totalorder %s2086_s21, 0 }
  0x10   : > { %s1995_s30 = smov [#allocation4]   ;;  %s1996_s14 = smov [#allocation7]  }
  0x11   : > { %p2114_p10 = pnand %p1596_p7, %p293_p8  ;;  %s311_s12 = sshll.u32 %s1995_s30, 4  ;;  %s312_s12 = int_to_ptr.vmem [resolvable:$true] %s311_s12 }
  0x12   : > { %s327_s15 = sshll.u32 %s1996_s14, 4  ;;  %s1884_s16 = scalar_lea.vmem %s312_s12, 3072  ;;  %s328_s15 = int_to_ptr.vmem [resolvable:$true] %s327_s15 }
  0x13   : > { %p1815_p11 = pneg %p2114_p10  ;;  %p1885_p0 = scmp.ne.s32.totalorder %s312_s12, %s1884_s16 }
  0x14   : > { %p1892_p3 = scmp.lt.s32.totalorder %s312_s12, %s312_s12  ;;  %p1893_p4 = scmp.lt.s32.totalorder %s1884_s16, %s1884_s16 }
  0x15   : > { %p2122_p12 = pnand %p2476_p9, %p1815_p11 }
  0x16   : > { %p1894_p7 = por %p1893_p4, %p1892_p3 }
  0x17   : > { %p1875_p13 = pneg %p2122_p12 }
  0x19   : > { %p1887_p1 = pnand %p1885_p0, %p1875_p13 }
  0x1b   : > { %p1888_p2 = pneg %p1887_p1 }
  0x1d   : > { %p1895_p8 = pnand %p1894_p7, %p1888_p2 }
  0x1f   : > { %1898 = shalt.err (!%p1895_p8)
}
  0x20   : > { %s1997_s22 = smov 128   ;;  %s1998_s24 = smov 8  }
  0x21   : > { %1818 = dma.hbm_to_vmem [thread:$0]  (!%p2122_p12), %s2467_s3, 3072, %s312_s12, [#allocation5], %s1997_s22, %s1997_s22, %s1998_s24  }
  0x22   : > { %s1910_s14 = scalar_lea.vmem %s328_s15, 12288  ;;  %p1918_p9 = scmp.lt.s32.totalorder %s328_s15, %s328_s15 }
  0x23   : > { %p1911_p11 = scmp.ne.s32.totalorder %s328_s15, %s1910_s14  ;;  %p1919_p6 = scmp.lt.s32.totalorder %s1910_s14, %s1910_s14 }
  0x25   : > { %p1913_p0 = pnand %p1911_p11, %p1875_p13  ;;  %p1920_p3 = por %p1919_p6, %p1918_p9 }
  0x27   : > { %p1914_p1 = pneg %p1913_p0 }
  0x29   : > { %p1921_p2 = pnand %p1920_p3, %p1914_p1 }
  0x2b   : > { %1924 = shalt.err (!%p1921_p2)
}
  0x2c   : > { %s1999_s16 = smov 256   ;;  %s2000_s26 = smov 16  }
  0x2d   : > { %1821 = dma.hbm_to_vmem [thread:$0]  (!%p2122_p12), %s2469_s5, 12288, %s328_s15, [#allocation8], %s1999_s16, %s1999_s16, %s2000_s26  }
  0x2e   : > { %366 = sbr.rel (%p2114_p10) target bundleno = 1195 (0x4ab), region = 64  ;;  %p2487_p4 = scmp.eq.s32.totalorder (!%p2114_p10), %s2086_s21, 0 }
  0x33   : > { %1968 = dma.done.wait (%p2487_p4), [#allocation5], 3072   ;;  %p2488_p13 = pmov %p2487_p4 }
  0x34   : > { %p2489_p6 = pmov %p2487_p4 }
  0x35   : > { %1970 = vsyncadd (%p2488_p13), [#allocation5], 4294964224 }
  0x36   : > { %1972 = dma.done.wait (%p2489_p6), [#allocation8], 12288   ;;  %p2490_p9 = pmov %p2487_p4 }
  0x37   : > { %p409_p7 = scmp.lt.s32.totalorder %s2086_s21, 1  ;;  %v2001_v0 = vmov 0.0   ;;  %vm434_vm0 = vcmask 1042432   ;;  %vm427_vm1 = vcmask 220160   ;;  %v419_v1 = vld [vmem:[%s2465_s1 + $0x18] sm:$0x7]  ;;  %v521_v25 = vlaneseq }
  0x38   : > { %1974 = vsyncadd (%p2490_p9), [#allocation8], 4294955008  ;;  %953 = vst [vmem:[#allocation3] sm:$0xff] %v2001_v0  ;;  %1732 = vmatprep.subr.mxu0 %v2001_v0  ;;  %v418_v2 = vld [vmem:[%s2465_s1 + $0x10] sm:$0xff]  ;;  %1702 = vmatprep.subr.msk.mxu1 %vm434_vm0, %v419_v1  ;;  %v417_v4 = vld [vmem:[%s2465_s1 + $0x8] sm:$0xff]  ;;  %vm616_vm2 = vcmask 523264  }
  0x39   : > { %954 = vst [vmem:[#allocation3 + $0x8] sm:$0xff] %v2001_v0  ;;  %s410_s19 = scalar_select %p409_p7, %s2086_s21, 1  ;;  %1703 = vmatpush3.msk.msra.mxu1 %vm434_vm0, %v419_v1  ;;  %v416_v5 = vld [vmem:[%s2465_s1] sm:$0xff]  ;;  %v662_v7 = vld [vmem:[#allocation4 + $0x78] sm:$0xff]  ;;  %v660_v11 = vld [vmem:[#allocation4 + $0x68] sm:$0xff]  ;;  %vm2002_vm3 = vmmov 0  }
  0x3a   : > { %1704 = vmatprep.subr.mxu1 %v418_v2  ;;  %v652_v8 = vld [vmem:[#allocation4 + $0x38] sm:$0xff]  ;;  %v661_v9 = vld [vmem:[#allocation4 + $0x70] sm:$0xff]  ;;  %v650_v12 = vld [vmem:[#allocation4 + $0x28] sm:$0xff]  ;;  %617 = vst.msk [vmem:[#allocation2] sm:$0xff] %vm616_vm2, %v2001_v0  ;;  %1748 = vmatprep.mubr.msk.f32.mxu0 %vm2002_vm3, %v2001_v0  ;;  %v2003_v23 = vmov 1983009808  }
  0x3b   : > { %s1616_s23 = sshll.u32 %s410_s19, 4  ;;  %1705 = vmatpush3.msra.mxu1 %v418_v2  ;;  %1733 = vmatpush3.msra.mxu0 %v652_v8  ;;  %v651_v10 = vld [vmem:[#allocation4 + $0x30] sm:$0xff]  ;;  %v659_v13 = vld [vmem:[#allocation4 + $0x60] sm:$0xff]  ;;  %v658_v15 = vld [vmem:[#allocation4 + $0x58] sm:$0xff]  ;;  %618 = vst.msk [vmem:[#allocation2 + $0x8] sm:$0xff] %vm616_vm2, %v2001_v0  ;;  %v519_v24 = vunpack.c.l.s4 %v2003_v23  ;;  %v2202_v27 = vshrl.u32 %v521_v25, 7 }
  0x3c   : > { %s413_s12 = scalar_lea.vmem %s2464_s0, %s1616_s23  ;;  %1706 = vmatprep.subr.mxu1 %v417_v4  ;;  %1734 = vmatprep.subr.mxu0 %v2001_v0  ;;  %v649_v14 = vld [vmem:[#allocation4 + $0x20] sm:$0xff]  ;;  %v648_v16 = vld [vmem:[#allocation4 + $0x18] sm:$0xff]  ;;  %v657_v17 = vld [vmem:[#allocation4 + $0x50] sm:$0xff]  ;;  %619 = vst.msk [vmem:[#allocation2 + $0x10] sm:$0xff] %vm616_vm2, %v2001_v0  ;;  %vm559_vm4 = vcmask 517120   ;;  %vm628_vm5 = vcmask 1041409  }
  0x3d   : > { %v414_v3 = vld [vmem:[%s413_s12] sm:$0xff]  ;;  %1707 = vmatpush3.msra.mxu1 %v417_v4  ;;  %v415_v6 = vld [vmem:[%s413_s12 + $0x8] sm:$0xff]  ;;  %1735 = vmatpush3.msra.mxu0 %v651_v10  ;;  %v656_v19 = vld [vmem:[#allocation4 + $0x48] sm:$0xff]  ;;  %v520_v26 = vunpack.c.0.s8 %v519_v24  ;;  %vm630_vm6 = vcmask 1042434   ;;  %vm632_vm7 = vcmask 1043459   ;;  %vm634_vm8 = vcmask 1044484  }
  0x3e   : > { %1710 = vmatprep.mubr.msk.f32.mxu1 %vm427_vm1, %v414_v3  ;;  %1708 = vmatprep.subr.mxu1 %v416_v5  ;;  %v647_v18 = vld [vmem:[#allocation4 + $0x10] sm:$0xff]  ;;  %v646_v20 = vld [vmem:[#allocation4 + $0x8] sm:$0xff]  ;;  %v655_v21 = vld [vmem:[#allocation4 + $0x40] sm:$0xff]  ;;  %vm636_vm9 = vcmask 1045509   ;;  %vm638_vm10 = vcmask 1046534   ;;  %vm640_vm11 = vcmask 1047559  }
  0x3f   : > { %1709 = vmatpush3.msra.mxu1 %v416_v5  ;;  %1736 = vmatprep.subr.mxu0 %v2001_v0  ;;  %v645_v22 = vld [vmem:[#allocation4] sm:$0xff]  ;;  %v1605_v28 = vld [vmem:[%s2466_s2] ss:$0 sm:$0xff]  ;;  %v2208_v31 = vsub.s32 %v520_v26, %v2202_v27  ;;  %vm924_vm12 = vcmask 1041408   ;;  %vm1297_vm13 = vcmask 1043456   ;;  %s407_s19 = sand.u32 1, %s1985_s18  }
  0x40   : > { %1711 = vmatmul.mubr.msk.f32.vlgmr.msra.gmra.mxu1 %vm427_vm1, %v415_v6  ;;  %1713 = vmatprep.subr.mxu1 %v2001_v0  ;;  %s1613_s29 = sshll.u32 %s2086_s21, 4  ;;  %s408_s12 = scalar_lea.vmem [#allocation9], %s407_s19  ;;  %vm1503_vm14 = vcmask 40960  }
  0x41   : > { %1714 = vmatpush3.msra.mxu1 %v662_v7  ;;  %1737 = vmatpush3.msra.mxu0 %v650_v12  ;;  %s1518_s13 = sshll.u32 %s408_s12, 4  ;;  %s2429_s24 = scalar_lea.hbm %s2475_s11, %s1613_s29  ;;  %s1519_s13 = int_to_ptr.vmem [resolvable:$true] %s1518_s13 }
  0x42   : > { %1715 = vmatprep.subr.mxu1 %v2001_v0  ;;  %1738 = vmatprep.subr.mxu0 %v2001_v0  ;;  %s1506_s25 = scalar_lea.sflag [#allocation6], %s407_s19  ;;  %s1925_s30 = scalar_lea.vmem %s1519_s13, 16 }
  0x43   : > { %1716 = vmatpush3.msra.mxu1 %v661_v9  ;;  %1739 = vmatpush3.msra.mxu0 %v649_v14  ;;  %p1926_p10 = scmp.ne.s32.totalorder %s1519_s13, %s1925_s30  ;;  %s2004_s21 = smov [#allocation9]  }
  0x44   : > { %1717 = vmatprep.subr.mxu1 %v2001_v0  ;;  %1740 = vmatprep.subr.mxu0 %v2001_v0  ;;  %s1929_s14 = sshll.u32 %s2004_s21, 4  ;;  %s1930_s14 = int_to_ptr.vmem [resolvable:$false] %s1929_s14 }
  0x45   : > { %1718 = vmatpush3.msra.mxu1 %v660_v11  ;;  %1741 = vmatpush3.msra.mxu0 %v648_v16  ;;  %p1927_p12 = pnand %p1926_p10, %p2103_p5  ;;  %s1931_s16 = scalar_lea.vmem %s1930_s14, 32 }
  0x46   : > { %1719 = vmatprep.subr.mxu1 %v2001_v0  ;;  %1742 = vmatprep.subr.mxu0 %v2001_v0  ;;  %p1932_p11 = scmp.lt.s32.totalorder %s1519_s13, %s1930_s14  ;;  %p1933_p0 = scmp.lt.s32.totalorder %s1931_s16, %s1925_s30 }
  0x47   : > { %1720 = vmatpush3.msra.mxu1 %v659_v13  ;;  %1743 = vmatpush3.msra.mxu0 %v647_v18  ;;  %p1928_p8 = pneg %p1927_p12 }
  0x48   : > { %1721 = vmatprep.subr.mxu1 %v2001_v0  ;;  %1744 = vmatprep.subr.mxu0 %v2001_v0  ;;  %p1934_p1 = por %p1933_p0, %p1932_p11 }
  0x49   : > { %1722 = vmatpush3.msra.mxu1 %v658_v15  ;;  %1745 = vmatpush3.msra.mxu0 %v646_v20 }
  0x4a   : > { %1723 = vmatprep.subr.mxu1 %v2001_v0  ;;  %1746 = vmatprep.subr.mxu0 %v2001_v0  ;;  %p1935_p3 = pnand %p1934_p1, %p1928_p8 }
  0x4b   : > { %1724 = vmatpush3.msra.mxu1 %v657_v17  ;;  %1729 = vmatprep.mubr.msk.f32.mxu1 %vm2002_vm3, %v2001_v0 }
  0x4c   : > { %1725 = vmatprep.subr.mxu1 %v2001_v0  ;;  %1747 = vmatpush3.msra.mxu0 %v645_v22 }
  0x4d   : > { %1726 = vmatpush3.msra.mxu1 %v656_v19 }
  0x4e   : > { %1727 = vmatprep.subr.mxu1 %v2001_v0 }
  0x4f   : > { %1728 = vmatpush3.msra.mxu1 %v655_v21 }
  0x50   : > { %1751 = vmatprep.subr.mxu1 %v2001_v0 }
 0x100   : > { %v1712_v29 = vpop.f32.mrf.mxu1 }
 0x101   : > { %v510_v30 = vadd.f32 %v1712_v29, %v1605_v28 }
 0x102   : > { %v504_v32 = vpop.f32.mrf.mxu1 }
 0x103   : > { %v514_v33 = vmax.f32 %v510_v30, 0.0  ;;  %v505_v34 = vadd.f32 %v1605_v28, %v504_v32 }
 0x105   : > { %v534_v35 = vcombine.high %v514_v33, %v514_v33  ;;  %v541_v36 = vrot.slane %v514_v33, %v2208_v31  ;;  %v513_v37 = vmax.f32 %v505_v34, 0.0 }
 0x107   : > { %v548_v38 = vrot.slane %v534_v35, %v2208_v31  ;;  %v549_v39 = vcombine.high %v541_v36, %v541_v36  ;;  %v588_v40 = vsel %vm559_vm4, %v541_v36, -inf  ;;  %v517_v41 = vcombine.high %v513_v37, %v513_v37 }
 0x108   : > { %v589_v42 = vrot.slane %v588_v40, 4  ;;  %v524_v43 = vrot.slane %v513_v37, %v2208_v31 }
 0x109   : > { %v550_v44 = vcombine.high %v548_v38, %v548_v38  ;;  %v595_v45 = vsel %vm559_vm4, %v549_v39, -inf  ;;  %v602_v46 = vsel %vm559_vm4, %v548_v38, -inf  ;;  %v531_v47 = vrot.slane %v517_v41, %v2208_v31 }
 0x10a   : > { %v596_v48 = vrot.slane %v595_v45, 4  ;;  %v603_v49 = vrot.slane %v602_v46, 4  ;;  %v532_v50 = vcombine.high %v524_v43, %v524_v43  ;;  %v560_v53 = vsel %vm559_vm4, %v524_v43, -inf }
 0x10b   : > { %v609_v51 = vsel %vm559_vm4, %v550_v44, -inf  ;;  %v533_v52 = vcombine.high %v531_v47, %v531_v47  ;;  %v574_v54 = vsel %vm559_vm4, %v531_v47, -inf  ;;  %v590_v55 = vmax.f32 %v588_v40, %v589_v42 }
 0x10c   : > { %v597_v56 = vmax.f32 %v595_v45, %v596_v48  ;;  %v610_v57 = vrot.slane %v609_v51, 4  ;;  %v561_v58 = vrot.slane %v560_v53, 4  ;;  %v567_v59 = vsel %vm559_vm4, %v532_v50, -inf  ;;  %v818_v48 = vld [vmem:[#allocation4 + $0xb8] sm:$0xff] }
 0x10d   : > { %v575_v60 = vrot.slane %v574_v54, 4  ;;  %v581_v61 = vsel %vm559_vm4, %v533_v52, -inf  ;;  %v604_v62 = vmax.f32 %v602_v46, %v603_v49  ;;  %v568_v2 = vrot.slane %v567_v59, 4  ;;  %v816_v52 = vld [vmem:[#allocation4 + $0xa8] sm:$0xff] }
 0x10e   : > { %v611_v63 = vmax.f32 %v609_v51, %v610_v57  ;;  %v562_v1 = vmax.f32 %v560_v53, %v561_v58  ;;  %v582_v4 = vrot.slane %v581_v61, 4  ;;  %v591_v5 = vrot.slane %v590_v55, 2  ;;  %v817_v51 = vld [vmem:[#allocation4 + $0xb0] sm:$0xff]  ;;  %v815_v53 = vld [vmem:[#allocation4 + $0xa0] sm:$0xff] }
 0x10f   : > { %v576_v3 = vmax.f32 %v574_v54, %v575_v60  ;;  %v598_v6 = vrot.slane %v597_v56, 2  ;;  %v569_v8 = vmax.f32 %v567_v59, %v568_v2  ;;  %v605_v11 = vrot.slane %v604_v62, 2  ;;  %v814_v54 = vld [vmem:[#allocation4 + $0x98] sm:$0xff]  ;;  %v811_v57 = vld [vmem:[#allocation4 + $0x80] sm:$0xff]  ;;  %v1030_v60 = vld [vmem:[#allocation7 + $0x1f0] sm:$0xff] }
 0x110   : > { %v563_v7 = vrot.slane %v562_v1, 2  ;;  %v583_v10 = vmax.f32 %v581_v61, %v582_v4  ;;  %v612_v12 = vrot.slane %v611_v63, 2  ;;  %v592_v17 = vmax.f32 %v590_v55, %v591_v5  ;;  %v813_v55 = vld [vmem:[#allocation4 + $0x90] sm:$0xff]  ;;  %v1031_v59 = vld [vmem:[#allocation7 + $0x1f8] sm:$0xff]  ;;  %v995_v2 = vld [vmem:[#allocation7 + $0xe8] sm:$0xff] }
 0x111   : > { %v577_v9 = vrot.slane %v576_v3, 2  ;;  %v570_v14 = vrot.slane %v569_v8, 2  ;;  %v599_v18 = vmax.f32 %v597_v56, %v598_v6  ;;  %v606_v23 = vmax.f32 %v604_v62, %v605_v11  ;;  %v812_v56 = vld [vmem:[#allocation4 + $0x88] sm:$0xff]  ;;  %1032 = vmatprep.subr.mxu0 %v1031_v59  ;;  %v997_v61 = vld [vmem:[#allocation7 + $0xf8] sm:$0xff]  ;;  %v994_v4 = vld [vmem:[#allocation7 + $0xe0] sm:$0xff] }
 0x112   : > { %v564_v13 = vmax.f32 %v562_v1, %v563_v7  ;;  %v584_v16 = vrot.slane %v583_v10, 2  ;;  %v613_v24 = vmax.f32 %v611_v63, %v612_v12  ;;  %v593_v28 = vrot.slane %v592_v17, 1  ;;  %v1029_v62 = vld [vmem:[#allocation7 + $0x1e8] sm:$0xff]  ;;  %v996_v63 = vld [vmem:[#allocation7 + $0xf0] sm:$0xff]  ;;  %v1028_v1 = vld [vmem:[#allocation7 + $0x1e0] sm:$0xff] }
 0x113   : > { %v578_v15 = vmax.f32 %v576_v3, %v577_v9  ;;  %v571_v20 = vmax.f32 %v569_v8, %v570_v14  ;;  %v600_v30 = vrot.slane %v599_v18, 1  ;;  %v607_v35 = vrot.slane %v606_v23, 1  ;;  %v1027_v3 = vld [vmem:[#allocation7 + $0x1d8] sm:$0xff]  ;;  %v1026_v5 = vld [vmem:[#allocation7 + $0x1d0] sm:$0xff]  ;;  %v1025_v7 = vld [vmem:[#allocation7 + $0x1c8] sm:$0xff] }
 0x114   : > { %v565_v19 = vrot.slane %v564_v13, 1  ;;  %v585_v22 = vmax.f32 %v583_v10, %v584_v16  ;;  %v614_v36 = vrot.slane %v613_v24, 1  ;;  %v594_v38 = vmax.f32 %v592_v17, %v593_v28  ;;  %v993_v6 = vld [vmem:[#allocation7 + $0xd8] sm:$0xff]  ;;  %v992_v8 = vld [vmem:[#allocation7 + $0xd0] sm:$0xff]  ;;  %v1024_v9 = vld [vmem:[#allocation7 + $0x1c0] sm:$0xff] }
 0x115   : > { %v579_v21 = vrot.slane %v578_v15, 1  ;;  %v572_v25 = vrot.slane %v571_v20, 1  ;;  %v601_v40 = vmax.f32 %v599_v18, %v600_v30  ;;  %v608_v42 = vmax.f32 %v606_v23, %v607_v35  ;;  %v991_v10 = vld [vmem:[#allocation7 + $0xc8] sm:$0xff]  ;;  %v1023_v11 = vld [vmem:[#allocation7 + $0x1b8] sm:$0xff]  ;;  %v990_v12 = vld [vmem:[#allocation7 + $0xc0] sm:$0xff] }
 0x116   : > { %v586_v26 = vrot.slane %v585_v22, 1  ;;  %v566_v32 = vmax.f32 %v564_v13, %v565_v19  ;;  %v615_v44 = vmax.f32 %v613_v24, %v614_v36  ;;  %v1022_v13 = vld [vmem:[#allocation7 + $0x1b0] sm:$0xff]  ;;  %v989_v14 = vld [vmem:[#allocation7 + $0xb8] sm:$0xff]  ;;  %v1020_v17 = vld [vmem:[#allocation7 + $0x1a0] sm:$0xff] }
 0x117   : > { %v580_v29 = vmax.f32 %v578_v15, %v579_v21  ;;  %v573_v33 = vmax.f32 %v571_v20, %v572_v25  ;;  %v1021_v15 = vld [vmem:[#allocation7 + $0x1a8] sm:$0xff]  ;;  %v988_v16 = vld [vmem:[#allocation7 + $0xb0] sm:$0xff]  ;;  %v1019_v19 = vld [vmem:[#allocation7 + $0x198] sm:$0xff] }
 0x118   : > { %v587_v34 = vmax.f32 %v585_v22, %v586_v26  ;;  %v987_v18 = vld [vmem:[#allocation7 + $0xa8] sm:$0xff]  ;;  %v986_v20 = vld [vmem:[#allocation7 + $0xa0] sm:$0xff]  ;;  %v1018_v21 = vld [vmem:[#allocation7 + $0x190] sm:$0xff] }
 0x119   : > { %v629_v37 = vsel %vm628_vm5, %v573_v33, %v566_v32  ;;  %v985_v22 = vld [vmem:[#allocation7 + $0x98] sm:$0xff]  ;;  %v1017_v23 = vld [vmem:[#allocation7 + $0x188] sm:$0xff]  ;;  %v984_v24 = vld [vmem:[#allocation7 + $0x90] sm:$0xff] }
 0x11a   : > { %v631_v39 = vsel %vm630_vm6, %v580_v29, %v629_v37  ;;  %v1016_v25 = vld [vmem:[#allocation7 + $0x180] sm:$0xff]  ;;  %v983_v26 = vld [vmem:[#allocation7 + $0x88] sm:$0xff]  ;;  %v1015_v28 = vld [vmem:[#allocation7 + $0x178] sm:$0xff] }
 0x11b   : > { %v633_v41 = vsel %vm632_vm7, %v587_v34, %v631_v39  ;;  %v982_v29 = vld [vmem:[#allocation7 + $0x80] sm:$0xff]  ;;  %v1014_v30 = vld [vmem:[#allocation7 + $0x170] sm:$0xff]  ;;  %v981_v32 = vld [vmem:[#allocation7 + $0x78] sm:$0xff] }
 0x11c   : > { %v635_v43 = vsel %vm634_vm8, %v594_v38, %v633_v41  ;;  %v1013_v33 = vld [vmem:[#allocation7 + $0x168] sm:$0xff]  ;;  %v980_v34 = vld [vmem:[#allocation7 + $0x70] sm:$0xff]  ;;  %v1012_v35 = vld [vmem:[#allocation7 + $0x160] sm:$0xff] }
 0x11d   : > { %v637_v45 = vsel %vm636_vm9, %v601_v40, %v635_v43  ;;  %v979_v36 = vld [vmem:[#allocation7 + $0x68] sm:$0xff]  ;;  %v1011_v37 = vld [vmem:[#allocation7 + $0x158] sm:$0xff]  ;;  %v978_v38 = vld [vmem:[#allocation7 + $0x60] sm:$0xff] }
 0x11e   : > { %v639_v46 = vsel %vm638_vm10, %v608_v42, %v637_v45  ;;  %v1010_v39 = vld [vmem:[#allocation7 + $0x150] sm:$0xff]  ;;  %v977_v40 = vld [vmem:[#allocation7 + $0x58] sm:$0xff]  ;;  %v1009_v41 = vld [vmem:[#allocation7 + $0x148] sm:$0xff] }
 0x11f   : > { %v641_v47 = vsel %vm640_vm11, %v615_v44, %v639_v46  ;;  %v976_v42 = vld [vmem:[#allocation7 + $0x50] sm:$0xff]  ;;  %v1008_v43 = vld [vmem:[#allocation7 + $0x140] sm:$0xff]  ;;  %v975_v44 = vld [vmem:[#allocation7 + $0x48] sm:$0xff] }
 0x120   : > { %643 = vst.msk [vmem:[#allocation2 + $0x8] sm:$0xff] %vm616_vm2, %v641_v47  ;;  %v1007_v45 = vld [vmem:[#allocation7 + $0x138] sm:$0xff]  ;;  %v974_v46 = vld [vmem:[#allocation7 + $0x40] sm:$0xff]  ;;  %v1006_v47 = vld [vmem:[#allocation7 + $0x130] sm:$0xff] }
 0x121   : > { %v1000_v59 = vld [vmem:[#allocation7 + $0x100] sm:$0xff] }
 0x127   : > { %v653_v49 = vld [vmem:[#allocation2 + $0x8] sm:$0xff] }
 0x128   : > { %v644_v50 = vld [vmem:[#allocation2 + $0x7] sm:$0xff]  ;;  %1730 = vmatmul.mubr.msk.f32.vlgmr.msra.gmra.mxu1 %vm616_vm2, %v653_v49  ;;  %v1005_v49 = vld [vmem:[#allocation7 + $0x128] sm:$0xff] }
 0x129   : > { %1749 = vmatmul.mubr.msk.f32.vlgmr.msra.gmra.mxu0 %vm616_vm2, %v644_v50  ;;  %1752 = vmatpush3.msra.mxu1 %v818_v48  ;;  %v809_v58 = vld [vmem:[#allocation2 + $0x9] sm:$0xff]  ;;  %v972_v50 = vld [vmem:[#allocation7 + $0x30] sm:$0xff] }
 0x12a   : > { %1767 = vmatprep.mubr.msk.f32.mxu1 %vm2002_vm3, %v2001_v0  ;;  %1753 = vmatprep.subr.mxu1 %v2001_v0  ;;  %v973_v48 = vld [vmem:[#allocation7 + $0x38] sm:$0xff] }
 0x12b   : > { %1096 = vmatprep.mubr.f32.mxu0 %v2001_v0  ;;  %1754 = vmatpush3.msra.mxu1 %v817_v51  ;;  %v1004_v51 = vld [vmem:[#allocation7 + $0x120] sm:$0xff] }
 0x12c   : > { %1755 = vmatprep.subr.mxu1 %v2001_v0  ;;  %1033 = vmatpush1.msra.mxu0 %v1030_v60  ;;  %v967_v60 = vld [vmem:[#allocation7 + $0x8] sm:$0xff] }
 0x12d   : > { %1756 = vmatpush3.msra.mxu1 %v816_v52  ;;  %1034 = vmatprep.subr.mxu0 %v1029_v62  ;;  %v971_v52 = vld [vmem:[#allocation7 + $0x28] sm:$0xff]  ;;  %v1207_v62 = vld [vmem:[#allocation7 + $0x2f8] sm:$0xff] }
 0x12e   : > { %1757 = vmatprep.subr.mxu1 %v2001_v0  ;;  %1035 = vmatpush1.msra.mxu0 %v1028_v1 }
 0x12f   : > { %1758 = vmatpush3.msra.mxu1 %v815_v53  ;;  %1036 = vmatprep.subr.mxu0 %v1027_v3  ;;  %v1003_v53 = vld [vmem:[#allocation7 + $0x118] sm:$0xff] }
 0x130   : > { %1759 = vmatprep.subr.mxu1 %v2001_v0  ;;  %1037 = vmatpush1.msra.mxu0 %v1026_v5 }
 0x131   : > { %1760 = vmatpush3.msra.mxu1 %v814_v54  ;;  %1038 = vmatprep.subr.mxu0 %v1025_v7  ;;  %v970_v54 = vld [vmem:[#allocation7 + $0x20] sm:$0xff] }
 0x132   : > { %1761 = vmatprep.subr.mxu1 %v2001_v0  ;;  %1039 = vmatpush1.msra.mxu0 %v1024_v9 }
 0x133   : > { %1762 = vmatpush3.msra.mxu1 %v813_v55  ;;  %1040 = vmatprep.subr.mxu0 %v1023_v11  ;;  %v1002_v55 = vld [vmem:[#allocation7 + $0x110] sm:$0xff] }
 0x134   : > { %1763 = vmatprep.subr.mxu1 %v2001_v0  ;;  %1041 = vmatpush1.msra.mxu0 %v1022_v13 }
 0x135   : > { %1764 = vmatpush3.msra.mxu1 %v812_v56  ;;  %1042 = vmatprep.subr.mxu0 %v1021_v15  ;;  %v969_v56 = vld [vmem:[#allocation7 + $0x18] sm:$0xff] }
 0x136   : > { %1765 = vmatprep.subr.mxu1 %v2001_v0  ;;  %1043 = vmatpush1.msra.mxu0 %v1020_v17 }
 0x137   : > { %1766 = vmatpush3.msra.mxu1 %v811_v57  ;;  %1044 = vmatprep.subr.mxu0 %v1019_v19  ;;  %v1001_v57 = vld [vmem:[#allocation7 + $0x108] sm:$0xff] }
 0x138   : > { %1768 = vmatmul.mubr.msk.f32.vlgmr.msra.gmra.mxu1 %vm616_vm2, %v809_v58  ;;  %1103 = vmatprep.subr.mxu1 %v997_v61  ;;  %v968_v58 = vld [vmem:[#allocation7 + $0x10] sm:$0xff]  ;;  %v966_v61 = vld [vmem:[#allocation7] sm:$0xff] }
 0x139   : > { %1167 = vmatprep.mubr.f32.mxu1 %v2001_v0  ;;  %1104 = vmatpush1.msra.mxu1 %v996_v63 }
 0x13a   : > { %1105 = vmatprep.subr.mxu1 %v995_v2  ;;  %1045 = vmatpush1.msra.mxu0 %v1018_v21 }
 0x13b   : > { %1106 = vmatpush1.msra.mxu1 %v994_v4  ;;  %1046 = vmatprep.subr.mxu0 %v1017_v23 }
 0x13c   : > { %1107 = vmatprep.subr.mxu1 %v993_v6  ;;  %1047 = vmatpush1.msra.mxu0 %v1016_v25  ;;  %v1612_v6 = vld [vmem:[%s2468_s4] ss:$0 sm:$0xff] }
 0x13d   : > { %1108 = vmatpush1.msra.mxu1 %v992_v8  ;;  %1048 = vmatprep.subr.mxu0 %v1015_v28 }
 0x13e   : > { %1109 = vmatprep.subr.mxu1 %v991_v10  ;;  %1049 = vmatpush1.msra.mxu0 %v1014_v30 }
 0x13f   : > { %1110 = vmatpush1.msra.mxu1 %v990_v12  ;;  %1050 = vmatprep.subr.mxu0 %v1013_v33 }
 0x140   : > { %1111 = vmatprep.subr.mxu1 %v989_v14  ;;  %1051 = vmatpush1.msra.mxu0 %v1012_v35 }
 0x141   : > { %1112 = vmatpush1.msra.mxu1 %v988_v16  ;;  %1052 = vmatprep.subr.mxu0 %v1011_v37 }
 0x142   : > { %1113 = vmatprep.subr.mxu1 %v987_v18  ;;  %1053 = vmatpush1.msra.mxu0 %v1010_v39 }
 0x143   : > { %1114 = vmatpush1.msra.mxu1 %v986_v20  ;;  %1054 = vmatprep.subr.mxu0 %v1009_v41 }
 0x144   : > { %1115 = vmatprep.subr.mxu1 %v985_v22  ;;  %1055 = vmatpush1.msra.mxu0 %v1008_v43 }
 0x145   : > { %1116 = vmatpush1.msra.mxu1 %v984_v24  ;;  %1056 = vmatprep.subr.mxu0 %v1007_v45 }
 0x146   : > { %1117 = vmatprep.subr.mxu1 %v983_v26  ;;  %1057 = vmatpush1.msra.mxu0 %v1006_v47 }
 0x147   : > { %1118 = vmatpush1.msra.mxu1 %v982_v29  ;;  %1058 = vmatprep.subr.mxu0 %v1005_v49 }
 0x148   : > { %1119 = vmatprep.subr.mxu1 %v981_v32  ;;  %1059 = vmatpush1.msra.mxu0 %v1004_v51  ;;  %v1205_v51 = vld [vmem:[#allocation7 + $0x2e8] sm:$0xff] }
 0x149   : > { %1120 = vmatpush1.msra.mxu1 %v980_v34  ;;  %1060 = vmatprep.subr.mxu0 %v1003_v53  ;;  %v1203_v53 = vld [vmem:[#allocation7 + $0x2d8] sm:$0xff] }
 0x14a   : > { %1121 = vmatprep.subr.mxu1 %v979_v36  ;;  %1061 = vmatpush1.msra.mxu0 %v1002_v55  ;;  %v1201_v55 = vld [vmem:[#allocation7 + $0x2c8] sm:$0xff] }
 0x14b   : > { %1122 = vmatpush1.msra.mxu1 %v978_v38  ;;  %1062 = vmatprep.subr.mxu0 %v1001_v57  ;;  %v1199_v57 = vld [vmem:[#allocation7 + $0x2b8] sm:$0xff] }
 0x14c   : > { %1123 = vmatprep.subr.mxu1 %v977_v40  ;;  %1063 = vmatpush1.msra.mxu0 %v1000_v59  ;;  %v1197_v59 = vld [vmem:[#allocation7 + $0x2a8] sm:$0xff] }
 0x14d   : > { %1124 = vmatpush1.msra.mxu1 %v976_v42  ;;  %1208 = vmatprep.subr.mxu0 %v1207_v62  ;;  %v1194_v62 = vld [vmem:[#allocation7 + $0x290] sm:$0xff] }
 0x14e   : > { %1125 = vmatprep.subr.mxu1 %v975_v44 }
 0x14f   : > { %1126 = vmatpush1.msra.mxu1 %v974_v46 }
 0x150   : > { %1127 = vmatprep.subr.mxu1 %v973_v48  ;;  %v1206_v48 = vld [vmem:[#allocation7 + $0x2f0] sm:$0xff] }
 0x151   : > { %1128 = vmatpush1.msra.mxu1 %v972_v50 }
 0x152   : > { %1129 = vmatprep.subr.mxu1 %v971_v52  ;;  %v1204_v52 = vld [vmem:[#allocation7 + $0x2e0] sm:$0xff] }
 0x153   : > { %1130 = vmatpush1.msra.mxu1 %v970_v54  ;;  %v1202_v54 = vld [vmem:[#allocation7 + $0x2d0] sm:$0xff] }
 0x154   : > { %1131 = vmatprep.subr.mxu1 %v969_v56  ;;  %v1200_v56 = vld [vmem:[#allocation7 + $0x2c0] sm:$0xff] }
 0x155   : > { %1132 = vmatpush1.msra.mxu1 %v968_v58  ;;  %v1198_v58 = vld [vmem:[#allocation7 + $0x2b0] sm:$0xff] }
 0x156   : > { %1133 = vmatprep.subr.mxu1 %v967_v60  ;;  %v1196_v60 = vld [vmem:[#allocation7 + $0x2a0] sm:$0xff] }
 0x157   : > { %1134 = vmatpush1.msra.mxu1 %v966_v61  ;;  %v1195_v61 = vld [vmem:[#allocation7 + $0x298] sm:$0xff] }
 0x1e8   : > { %v732_v63 = vpop.f32.mrf.mxu1 }
 0x1e9   : > { %v805_v1 = vpop.f32.mrf.mxu0 }
 0x1ea   : > { %v1731_v2 = vpop.f32.mrf.mxu1  ;;  %v806_v4 = vadd.f32 %v805_v1, %v732_v63  ;;  %v1193_v63 = vld [vmem:[#allocation7 + $0x288] sm:$0xff]  ;;  %v1192_v1 = vld [vmem:[#allocation7 + $0x280] sm:$0xff] }
 0x1eb   : > { %v1750_v3 = vpop.f32.mrf.mxu0  ;;  %v1191_v2 = vld [vmem:[#allocation7 + $0x278] sm:$0xff] }
 0x1ec   : > { %v1190_v3 = vld [vmem:[#allocation7 + $0x270] sm:$0xff] }
 0x1f8   : > { %v888_v5 = vpop.f32.mrf.mxu1 }
 0x1f9   : > { %v892_v7 = vadd.f32 %v888_v5, %v806_v4  ;;  %v1189_v4 = vld [vmem:[#allocation7 + $0x268] sm:$0xff]  ;;  %v1188_v5 = vld [vmem:[#allocation7 + $0x260] sm:$0xff] }
 0x1fa   : > { %v1769_v8 = vpop.f32.mrf.mxu1 }
 0x1fb   : > { %v900_v9 = vadd.f32 %v1612_v6, %v892_v7  ;;  %v1187_v6 = vld [vmem:[#allocation7 + $0x258] sm:$0xff]  ;;  %v1186_v7 = vld [vmem:[#allocation7 + $0x250] sm:$0xff]  ;;  %v1185_v8 = vld [vmem:[#allocation7 + $0x248] sm:$0xff] }
 0x1fd   : > { %v901_v10 = vmax.f32 %v900_v9, 0.0  ;;  %v1184_v9 = vld [vmem:[#allocation7 + $0x240] sm:$0xff] }
 0x1ff   : > { %v903_v11 = vcombine.high %v901_v10, %v901_v10  ;;  %v910_v12 = vrot.slane %v901_v10, %v2208_v31  ;;  %v1183_v10 = vld [vmem:[#allocation7 + $0x238] sm:$0xff] }
 0x201   : > { %v917_v13 = vrot.slane %v903_v11, %v2208_v31  ;;  %v918_v14 = vcombine.high %v910_v12, %v910_v12  ;;  %v925_v15 = vsel %vm924_vm12, %v910_v12, -inf  ;;  %v1182_v11 = vld [vmem:[#allocation7 + $0x230] sm:$0xff]  ;;  %v1181_v12 = vld [vmem:[#allocation7 + $0x228] sm:$0xff] }
 0x202   : > { %v926_v16 = vrot.slane %v925_v15, 4 }
 0x203   : > { %v919_v17 = vcombine.high %v917_v13, %v917_v13  ;;  %v932_v18 = vsel %vm924_vm12, %v918_v14, -inf  ;;  %v939_v19 = vsel %vm924_vm12, %v917_v13, -inf  ;;  %v1180_v13 = vld [vmem:[#allocation7 + $0x220] sm:$0xff]  ;;  %v1179_v14 = vld [vmem:[#allocation7 + $0x218] sm:$0xff] }
 0x204   : > { %v927_v20 = vmax.f32 %v925_v15, %v926_v16  ;;  %v933_v21 = vrot.slane %v932_v18, 4  ;;  %v940_v22 = vrot.slane %v939_v19, 4  ;;  %v1178_v15 = vld [vmem:[#allocation7 + $0x210] sm:$0xff]  ;;  %v1177_v16 = vld [vmem:[#allocation7 + $0x208] sm:$0xff] }
 0x205   : > { %v946_v23 = vsel %vm924_vm12, %v919_v17, -inf  ;;  %v1176_v17 = vld [vmem:[#allocation7 + $0x200] sm:$0xff] }
 0x206   : > { %v928_v24 = vrot.slane %v927_v20, 2  ;;  %v934_v25 = vmax.f32 %v932_v18, %v933_v21  ;;  %v941_v26 = vmax.f32 %v939_v19, %v940_v22  ;;  %v947_v28 = vrot.slane %v946_v23, 4  ;;  %v1343_v19 = vld [vmem:[%s2471_s7 + $0xf8] sm:$0xff]  ;;  %v1342_v21 = vld [vmem:[%s2471_s7 + $0xf0] sm:$0xff] }
 0x207   : > { %1650 = vmatprep.subr.mxu1 %v1343_v19  ;;  %v1326_v22 = vld [vmem:[%s2471_s7 + $0x70] sm:$0xff] }
 0x208   : > { %v929_v29 = vmax.f32 %v927_v20, %v928_v24  ;;  %v935_v30 = vrot.slane %v934_v25, 2  ;;  %v942_v32 = vrot.slane %v941_v26, 2  ;;  %v948_v33 = vmax.f32 %v946_v23, %v947_v28  ;;  %v1327_v20 = vld [vmem:[%s2471_s7 + $0x78] sm:$0xff]  ;;  %v1325_v23 = vld [vmem:[%s2471_s7 + $0x68] sm:$0xff]  ;;  %v1340_v24 = vld [vmem:[%s2471_s7 + $0xe0] sm:$0xff] }
 0x209   : > { %v1323_v28 = vld [vmem:[%s2471_s7 + $0x58] sm:$0xff] }
 0x20a   : > { %v930_v34 = vrot.slane %v929_v29, 1  ;;  %v936_v31 = vmax.f32 %v934_v25, %v935_v30  ;;  %v943_v35 = vmax.f32 %v941_v26, %v942_v32  ;;  %v949_v36 = vrot.slane %v948_v33, 2  ;;  %v1324_v25 = vld [vmem:[%s2471_s7 + $0x60] sm:$0xff]  ;;  %v1339_v26 = vld [vmem:[%s2471_s7 + $0xd8] sm:$0xff]  ;;  %v1322_v30 = vld [vmem:[%s2471_s7 + $0x50] sm:$0xff] }
 0x20b   : > { %v1337_v32 = vld [vmem:[%s2471_s7 + $0xc8] sm:$0xff] }
 0x20c   : > { %v937_v37 = vrot.slane %v936_v31, 1  ;;  %v944_v38 = vrot.slane %v943_v35, 1  ;;  %v950_v39 = vmax.f32 %v948_v33, %v949_v36  ;;  %v931_v40 = vmax.f32 %v929_v29, %v930_v34  ;;  %v1338_v29 = vld [vmem:[%s2471_s7 + $0xd0] sm:$0xff]  ;;  %v1321_v33 = vld [vmem:[%s2471_s7 + $0x48] sm:$0xff]  ;;  %v1336_v34 = vld [vmem:[%s2471_s7 + $0xc0] sm:$0xff] }
 0x20d   : > { %v1319_v36 = vld [vmem:[%s2471_s7 + $0x38] sm:$0xff] }
 0x20e   : > { %v938_v41 = vmax.f32 %v936_v31, %v937_v37  ;;  %v945_v42 = vmax.f32 %v943_v35, %v944_v38  ;;  %v951_v43 = vrot.slane %v950_v39, 1  ;;  %v1320_v31 = vld [vmem:[%s2471_s7 + $0x40] sm:$0xff]  ;;  %v1335_v35 = vld [vmem:[%s2471_s7 + $0xb8] sm:$0xff]  ;;  %v1334_v37 = vld [vmem:[%s2471_s7 + $0xb0] sm:$0xff] }
 0x20f   : > { %v1318_v38 = vld [vmem:[%s2471_s7 + $0x30] sm:$0xff] }
 0x210   : > { %v952_v44 = vmax.f32 %v950_v39, %v951_v43  ;;  %v960_v45 = vsel %vm628_vm5, %v938_v41, %v931_v40  ;;  %v1333_v39 = vld [vmem:[%s2471_s7 + $0xa8] sm:$0xff]  ;;  %v1332_v41 = vld [vmem:[%s2471_s7 + $0xa0] sm:$0xff]  ;;  %v1331_v43 = vld [vmem:[%s2471_s7 + $0x98] sm:$0xff] }
 0x211   : > { %v961_v46 = vsel %vm630_vm6, %v945_v42, %v960_v45  ;;  %v1317_v40 = vld [vmem:[%s2471_s7 + $0x28] sm:$0xff]  ;;  %v1316_v42 = vld [vmem:[%s2471_s7 + $0x20] sm:$0xff]  ;;  %v1330_v45 = vld [vmem:[%s2471_s7 + $0x90] sm:$0xff] }
 0x212   : > { %v962_v47 = vsel %vm632_vm7, %v952_v44, %v961_v46  ;;  %v1315_v44 = vld [vmem:[%s2471_s7 + $0x18] sm:$0xff]  ;;  %v1314_v46 = vld [vmem:[%s2471_s7 + $0x10] sm:$0xff] }
 0x213   : > { %964 = vst [vmem:[#allocation3 + $0x8] sm:$0xf] %v962_v47  ;;  %v1329_v47 = vld [vmem:[%s2471_s7 + $0x88] sm:$0xff] }
 0x21a   : > { %v998_v49 = vld [vmem:[#allocation3 + $0x8] sm:$0xf] }
 0x21b   : > { %v965_v50 = vld [vmem:[#allocation3 + $0x7] sm:$0xf]  ;;  %1097 = vmatmul.mubr.f32.vlgmr.msra.gmra.mxu0 %v998_v49 }
 0x21c   : > { %1168 = vmatmul.mubr.f32.vlgmr.msra.gmra.mxu1 %v965_v50  ;;  %1209 = vmatpush1.msra.mxu0 %v1206_v48  ;;  %v1174_v18 = vld [vmem:[#allocation3 + $0x9] sm:$0xf]  ;;  %v1313_v48 = vld [vmem:[%s2471_s7 + $0x8] sm:$0xff] }
 0x21d   : > { %1272 = vmatprep.mubr.f32.mxu0 %v2001_v0  ;;  %1210 = vmatprep.subr.mxu0 %v1205_v51  ;;  %v1328_v49 = vld [vmem:[%s2471_s7 + $0x80] sm:$0xff]  ;;  %v1431_v51 = vld [vmem:[%s2473_s9 + $0x78] sm:$0xff] }
 0x21e   : > { %1211 = vmatpush1.msra.mxu0 %v1204_v52  ;;  %1651 = vmatpush3.msra.mxu1 %v1327_v20  ;;  %v1312_v50 = vld [vmem:[%s2471_s7] sm:$0xff]  ;;  %v1430_v52 = vld [vmem:[%s2473_s9 + $0x70] sm:$0xff] }
 0x21f   : > { %1212 = vmatprep.subr.mxu0 %v1203_v53  ;;  %1652 = vmatprep.subr.mxu1 %v1342_v21  ;;  %v2354_v53 = vld [vmem:[#allocation3] sm:$0xff] }
 0x220   : > { %1213 = vmatpush1.msra.mxu0 %v1202_v54  ;;  %1653 = vmatpush3.msra.mxu1 %v1326_v22  ;;  %v1429_v54 = vld [vmem:[%s2473_s9 + $0x68] sm:$0xff] }
 0x221   : > { %1214 = vmatprep.subr.mxu0 %v1201_v55  ;;  %v1428_v55 = vld [vmem:[%s2473_s9 + $0x60] sm:$0xff] }
 0x222   : > { %1215 = vmatpush1.msra.mxu0 %v1200_v56  ;;  %v1427_v56 = vld [vmem:[%s2473_s9 + $0x58] sm:$0xff] }
 0x223   : > { %1216 = vmatprep.subr.mxu0 %v1199_v57  ;;  %v1426_v57 = vld [vmem:[%s2473_s9 + $0x50] sm:$0xff] }
 0x224   : > { %1217 = vmatpush1.msra.mxu0 %v1198_v58  ;;  %v1425_v58 = vld [vmem:[%s2473_s9 + $0x48] sm:$0xff] }
 0x225   : > { %1218 = vmatprep.subr.mxu0 %v1197_v59  ;;  %v1424_v59 = vld [vmem:[%s2473_s9 + $0x40] sm:$0xff] }
 0x226   : > { %1219 = vmatpush1.msra.mxu0 %v1196_v60  ;;  %v1423_v60 = vld [vmem:[%s2473_s9 + $0x38] sm:$0xff] }
 0x227   : > { %1220 = vmatprep.subr.mxu0 %v1195_v61  ;;  %v1422_v61 = vld [vmem:[%s2473_s9 + $0x30] sm:$0xff] }
 0x228   : > { %1221 = vmatpush1.msra.mxu0 %v1194_v62  ;;  %v1421_v62 = vld [vmem:[%s2473_s9 + $0x28] sm:$0xff] }
 0x229   : > { %1222 = vmatprep.subr.mxu0 %v1193_v63 }
 0x22a   : > { %1223 = vmatpush1.msra.mxu0 %v1192_v1 }
 0x22b   : > { %1224 = vmatprep.subr.mxu0 %v1191_v2  ;;  %v1285_v2 = vsub.s32 0, %v2202_v27 }
 0x22c   : > { %1225 = vmatpush1.msra.mxu0 %v1190_v3  ;;  %v1281_v3 = vld [vmem:[%s2470_s6] sm:$0x3] }
 0x22d   : > { %1226 = vmatprep.subr.mxu0 %v1189_v4  ;;  %v1289_v4 = vsub.s32 1, %v2202_v27 }
 0x22e   : > { %1227 = vmatpush1.msra.mxu0 %v1188_v5 }
 0x22f   : > { %1228 = vmatprep.subr.mxu0 %v1187_v6 }
 0x230   : > { %1229 = vmatpush1.msra.mxu0 %v1186_v7 }
 0x231   : > { %1230 = vmatprep.subr.mxu0 %v1185_v8  ;;  %v1286_v8 = vrot.slane %v1281_v3, %v1285_v2 }
 0x232   : > { %1231 = vmatpush1.msra.mxu0 %v1184_v9 }
 0x233   : > { %1232 = vmatprep.subr.mxu0 %v1183_v10 }
 0x234   : > { %1233 = vmatpush1.msra.mxu0 %v1182_v11 }
 0x235   : > { %1234 = vmatprep.subr.mxu0 %v1181_v12  ;;  %v1290_v12 = vrot.slane %v1281_v3, %v1289_v4 }
 0x236   : > { %1235 = vmatpush1.msra.mxu0 %v1180_v13 }
 0x237   : > { %1236 = vmatprep.subr.mxu0 %v1179_v14 }
 0x238   : > { %1237 = vmatpush1.msra.mxu0 %v1178_v15 }
 0x239   : > { %1238 = vmatprep.subr.mxu0 %v1177_v16 }
 0x23a   : > { %1239 = vmatpush1.msra.mxu0 %v1176_v17 }
 0x23b   : > { %1273 = vmatmul.mubr.f32.vlgmr.msra.gmra.mxu0 %v1174_v18  ;;  %1770 = vmatprep.subr.mxu0 %v2001_v0 }
 0x23c   : > { %1802 = vmatprep.mubr.msk.f32.mxu0 %vm2002_vm3, %v2001_v0  ;;  %v1341_v0 = vld [vmem:[%s2471_s7 + $0xe8] sm:$0xff]  ;;  %1771 = vmatpush3.msra.mxu0 %v1431_v51 }
 0x23d   : > { %1654 = vmatprep.subr.mxu1 %v1341_v0  ;;  %1772 = vmatprep.subr.mxu0 %v2354_v53 }
 0x23e   : > { %1655 = vmatpush3.msra.mxu1 %v1325_v23  ;;  %1773 = vmatpush3.msra.mxu0 %v1430_v52 }
 0x23f   : > { %1656 = vmatprep.subr.mxu1 %v1340_v24  ;;  %1774 = vmatprep.subr.mxu0 %v2354_v53 }
 0x240   : > { %1657 = vmatpush3.msra.mxu1 %v1324_v25  ;;  %1775 = vmatpush3.msra.mxu0 %v1429_v54 }
 0x241   : > { %1658 = vmatprep.subr.mxu1 %v1339_v26  ;;  %1776 = vmatprep.subr.mxu0 %v2354_v53 }
 0x242   : > { %1659 = vmatpush3.msra.mxu1 %v1323_v28  ;;  %1777 = vmatpush3.msra.mxu0 %v1428_v55 }
 0x243   : > { %1660 = vmatprep.subr.mxu1 %v1338_v29  ;;  %1778 = vmatprep.subr.mxu0 %v2354_v53 }
 0x244   : > { %1661 = vmatpush3.msra.mxu1 %v1322_v30  ;;  %1779 = vmatpush3.msra.mxu0 %v1427_v56 }
 0x245   : > { %1662 = vmatprep.subr.mxu1 %v1337_v32  ;;  %1780 = vmatprep.subr.mxu0 %v2354_v53 }
 0x246   : > { %1663 = vmatpush3.msra.mxu1 %v1321_v33  ;;  %1781 = vmatpush3.msra.mxu0 %v1426_v57  ;;  %v1420_v33 = vld [vmem:[%s2473_s9 + $0x20] sm:$0xff] }
 0x247   : > { %1664 = vmatprep.subr.mxu1 %v1336_v34  ;;  %1782 = vmatprep.subr.mxu0 %v2354_v53  ;;  %v1419_v34 = vld [vmem:[%s2473_s9 + $0x18] sm:$0xff] }
 0x248   : > { %1665 = vmatpush3.msra.mxu1 %v1320_v31  ;;  %1783 = vmatpush3.msra.mxu0 %v1425_v58  ;;  %v1418_v31 = vld [vmem:[%s2473_s9 + $0x10] sm:$0xff] }
 0x249   : > { %1666 = vmatprep.subr.mxu1 %v1335_v35  ;;  %1784 = vmatprep.subr.mxu0 %v2354_v53  ;;  %v1417_v35 = vld [vmem:[%s2473_s9 + $0x8] sm:$0xff] }
 0x24a   : > { %1667 = vmatpush3.msra.mxu1 %v1319_v36  ;;  %1785 = vmatpush3.msra.mxu0 %v1424_v59  ;;  %v1416_v36 = vld [vmem:[%s2473_s9] sm:$0xff] }
 0x24b   : > { %1668 = vmatprep.subr.mxu1 %v1334_v37  ;;  %1786 = vmatprep.subr.mxu0 %v2354_v53 }
 0x24c   : > { %1669 = vmatpush3.msra.mxu1 %v1318_v38  ;;  %1787 = vmatpush3.msra.mxu0 %v1423_v60  ;;  %v1344_v38 = vld [vmem:[%s2472_s8] sm:$0x1] }
 0x24d   : > { %1670 = vmatprep.subr.mxu1 %v1333_v39  ;;  %1788 = vmatprep.subr.mxu0 %v2354_v53 }
 0x24e   : > { %1671 = vmatpush3.msra.mxu1 %v1317_v40  ;;  %1789 = vmatpush3.msra.mxu0 %v1422_v61 }
 0x24f   : > { %1672 = vmatprep.subr.mxu1 %v1332_v41  ;;  %1790 = vmatprep.subr.mxu0 %v2354_v53 }
 0x250   : > { %1673 = vmatpush3.msra.mxu1 %v1316_v42  ;;  %1791 = vmatpush3.msra.mxu0 %v1421_v62 }
 0x251   : > { %1674 = vmatprep.subr.mxu1 %v1331_v43  ;;  %1792 = vmatprep.subr.mxu0 %v2354_v53  ;;  %v1432_v43 = vld [vmem:[%s2474_s10] sm:$0x1] }
 0x252   : > { %1675 = vmatpush3.msra.mxu1 %v1315_v44  ;;  %1793 = vmatpush3.msra.mxu0 %v1420_v33 }
 0x253   : > { %1676 = vmatprep.subr.mxu1 %v1330_v45  ;;  %1794 = vmatprep.subr.mxu0 %v2354_v53 }
 0x254   : > { %1677 = vmatpush3.msra.mxu1 %v1314_v46  ;;  %1795 = vmatpush3.msra.mxu0 %v1419_v34 }
 0x255   : > { %1678 = vmatprep.subr.mxu1 %v1329_v47  ;;  %1796 = vmatprep.subr.mxu0 %v2354_v53 }
 0x256   : > { %1679 = vmatpush3.msra.mxu1 %v1313_v48  ;;  %1797 = vmatpush3.msra.mxu0 %v1418_v31 }
 0x257   : > { %1680 = vmatprep.subr.mxu1 %v1328_v49  ;;  %1798 = vmatprep.subr.mxu0 %v2354_v53 }
 0x258   : > { %1681 = vmatpush3.msra.mxu1 %v1312_v50  ;;  %1799 = vmatpush3.msra.mxu0 %v1417_v35 }
 0x259   : > { %1800 = vmatprep.subr.mxu0 %v2354_v53 }
 0x25a   : > { %1801 = vmatpush3.msra.mxu0 %v1416_v36 }
 0x2db   : > { %v1098_v63 = vpop.f32.mrf.mxu0 }
 0x2dc   : > { %v1169_v1 = vpop.f32.mrf.mxu1 }
 0x2dd   : > { %v1100_v5 = vpop.f32.mrf.mxu0  ;;  %v1170_v7 = vadd.f32 %v1169_v1, %v1098_v63 }
 0x2de   : > { %v1171_v6 = vpop.f32.mrf.mxu1 }
 0x2df   : > { %v1172_v10 = vadd.f32 %v1171_v6, %v1100_v5 }
 0x2fb   : > { %v1274_v9 = vpop.f32.mrf.mxu0 }
 0x2fc   : > { %v1279_v11 = vadd.f32 %v1274_v9, %v1170_v7 }
 0x2fd   : > { %v1276_v13 = vpop.f32.mrf.mxu0 }
 0x2fe   : > { %v1293_v14 = vadd.f32 %v1286_v8, %v1279_v11  ;;  %v1280_v15 = vadd.f32 %v1276_v13, %v1172_v10 }
 0x300   : > { %v1295_v16 = vmax.f32 %v1293_v14, 0.0  ;;  %v1294_v17 = vadd.f32 %v1290_v12, %v1280_v15 }
 0x302   : > { %v1298_v18 = vsel %vm1297_vm13, %v1295_v16, -inf  ;;  %v1296_v19 = vmax.f32 %v1294_v17, 0.0 }
 0x303   : > { %v1299_v20 = vrot.slane %v1298_v18, 4 }
 0x304   : > { %v1305_v21 = vsel %vm1297_vm13, %v1296_v19, -inf }
 0x305   : > { %v1300_v22 = vmax.f32 %v1298_v18, %v1299_v20  ;;  %v1306_v27 = vrot.slane %v1305_v21, 4 }
 0x307   : > { %v1301_v0 = vrot.slane %v1300_v22, 2  ;;  %v1307_v23 = vmax.f32 %v1305_v21, %v1306_v27 }
 0x309   : > { %v1302_v24 = vmax.f32 %v1300_v22, %v1301_v0  ;;  %v1308_v25 = vrot.slane %v1307_v23, 2 }
 0x30b   : > { %v1309_v26 = vmax.f32 %v1307_v23, %v1308_v25  ;;  %v1303_v28 = vrot.slane %v1302_v24, 1 }
 0x30d   : > { %v1310_v29 = vrot.slane %v1309_v26, 1  ;;  %v1304_v32 = vmax.f32 %v1302_v24, %v1303_v28 }
 0x30f   : > { %v1311_v30 = vmax.f32 %v1309_v26, %v1310_v29 }
 0x311   : > { %1409 = vmatprep.mubr.f32.mxu1 %v1311_v30 }
 0x312   : > { %1410 = vmatmul.mubr.f32.vlgmr.msra.gmra.mxu1 %v1304_v32 }
 0x3d2   : > { %v1682_v37 = vpop.f32.mrf.mxu1 }
 0x3d4   : > { %v1683_v39 = vpop.f32.mrf.mxu1 }
 0x3d5   : > { %v1684_v40 = vadd.f32 %v1683_v39, %v1682_v37 }
 0x3d7   : > { %v1412_v41 = vadd.f32 %v1684_v40, %v1344_v38 }
 0x3d9   : > { %v1415_v42 = vmax.f32 %v1412_v41, 0.0 }
 0x3db   : > { %1803 = vmatmul.mubr.f32.vlgmr.msra.gmra.mxu0 %v1415_v42 }
 0x49b   : > { %v1499_v44 = vpop.f32.mrf.mxu0 }
 0x49c   : > { %v1500_v45 = vadd.f32 %v1499_v44, %v1432_v43 }
 0x49d   : > { %v1804_v46 = vpop.f32.mrf.mxu0 }
 0x49e   : > { %1504 = vst.msk [vmem:[%s408_s12] sm:$0x1] %vm1503_vm14, %v1500_v45 }
 0x49f   : > { %1938 = shalt.err (!%p1935_p3)
}
 0x4a0   : > { %s1939_s23 = scalar_lea.hbm %s2429_s24, 16  ;;  %s1943_s29 = scalar_lea.hbm %s2475_s11, 32 }
 0x4a1   : > { %p1940_p2 = scmp.ne.s32.totalorder %s2429_s24, %s1939_s23  ;;  %p1944_p6 = scmp.lt.s32.totalorder %s2429_s24, %s2475_s11 }
 0x4a2   : > { %p1945_p9 = scmp.lt.s32.totalorder %s1943_s29, %s1939_s23 }
 0x4a3   : > { %p1941_p4 = pnand %p1940_p2, %p2103_p5 }
 0x4a4   : > { %p1946_p7 = por %p1945_p9, %p1944_p6 }
 0x4a5   : > { %p1942_p13 = pneg %p1941_p4 }
 0x4a7   : > { %p1947_p10 = pnand %p1946_p7, %p1942_p13 }
 0x4a9   : > { %1950 = shalt.err (!%p1947_p10)
}
 0x4aa   : > { %1813 = dma.vmem_to_hbm [thread:$0]  (%p2103_p5), %s1519_s13, 16, %s2429_s24, %s1506_s25  }
 0x4ab PF: > { %p1830_p12 = scmp.ge.s32.totalorder %s1993_s20, 2  ;;  %s1530_s22 = sand.u32 1, %s1981_s17  }
 0x4ac   : > { %p2491_p8 = scmp.ne.s32.totalorder %s2484_s28, 0  ;;  %s1531_s30 = scalar_lea.sflag [#allocation6], %s1530_s22 }
 0x4ae   : > { %p1823_p11 = pnand %p1830_p12, %p2491_p8 }
 0x4b0   : > { %p1824_p0 = pneg %p1823_p11 }
 0x4b2   : > { %1976 = dma.done.wait (%p1824_p0), %s1531_s30, 16  }
 0x4b3   : > { %1978 = vsyncadd (%p1824_p0), %s1531_s30, 4294967280  ;;  %s2492_s20 = sld [smem:[#allocation14_spill]]  ;;  %s2495_s17 = smov %s1985_s18 }
 0x4b4   : > { %s2493_s21 = sld [smem:[#allocation13_spill]] }
 0x4b5   : > { %s2494_s19 = sld [smem:[#allocation15_spill]] }
 0x4b9   : > { %p23_p1 = scmp.ge.s32.totalorder %s2492_s20, 4  }
 0x4ba   : > { %s2496_s18 = smov %s2493_s21 }
 0x4bb   :  { %25 = sbr.rel (!%p23_p1) target bundleno = 5 (0x5), region = 112 }
 0x4c0   :  { %1535 = vsyncpa [#allocation5], 1 }
 0x4c1   :  { %1537 = vsyncpa [#allocation5 + $0x1], 1 }
 0x4c2   :  { %1538 = vsyncpa [#allocation8], 1 }
 0x4c3   :  { %1539 = vsyncpa [#allocation6], 1 }
 0x4c4   :  { %1541 = vsyncpa [#allocation6 + $0x1], 1 }

</bundles_post_ra>
